<compile_context>
chip_gen: v6e
topology: v6e:2x2x1
jax: 0.10.0
libtpu: 0.0.40
codegen_flags: <defaults>
</compile_context>

<pallas_src>
import functools

import numpy as np

import jax
import jax.numpy as jnp
from jax.experimental import pallas as pl
from jax.experimental.pallas import tpu as pltpu


# ------------------------------ geometry ----------------------------------- #

def _round_up(x, m):
    return ((x + m - 1) // m) * m


def _conv_out(sz, k, stride, dil, pad):
    return (sz + 2 * pad - dil * (k - 1) - 1) // stride + 1


def _geometry(args, N, Cin, C1, C2, H, W):
    k1, d1, s1 = args["k_size_1"], args["dilation_1"], args["stride_1"]
    k2, d2, s2 = args["k_size_2"], args["dilation_2"], args["stride_2"]
    pool = args["maxpool_2"]
    P1, P2 = k1 - 1, k2 - 1                       # torch padding = k - 1
    g1, g2 = s1, s1 * s2                          # canvas grid spacing after conv1/conv2
    Ho1, Wo1 = _conv_out(H, k1, s1, d1, P1), _conv_out(W, k1, s1, d1, P1)
    Ho2, Wo2 = _conv_out(Ho1, k2, s2, d2, P2), _conv_out(Wo1, k2, s2, d2, P2)
    Hq, Wq = Ho2 // pool, Wo2 // pool
    r0 = P1 + P2 * s1                             # image offset inside the canvas
    Hc, Wc = H + 2 * r0, W + 2 * r0               # per-sample canvas with zero margins
    o1 = r0 - P1                                  # conv1 valid-output origin
    o2 = o1 - P2 * g1                             # conv2 valid-output origin (== 0)
    CP = 8                                        # channel rows padded to one sublane tile
    assert max(Cin, C1, C2) <= CP, \
        "TODO(synk): channel counts > 8 need CP raised in multiples of 8"

    HcWc = Hc * Wc
    Lslot = _round_up(HcWc, 128)                  # 128-aligned per-sample lane slot
    Lc = N * Lslot
    Sp = (pool - 1) * g2 * (Wc + 1)               # max pool-tap shift
    L2 = _round_up(Lc + Sp, 128)                  # relu(conv2) buffer length
    S2 = (k2 - 1) * d2 * g1 * (Wc + 1)            # max conv2-tap shift
    L1 = _round_up(L2 + S2, 128)                  # masked relu(conv1) buffer length
    S1 = (k1 - 1) * d1 * (Wc + 1)                 # max conv1-tap shift
    Lx = _round_up(L1 + S1, 128)                  # canvas buffer length
    K1, K2 = k1 * k1 * CP, k2 * k2 * CP           # fused im2col contraction sizes

    # Static safety checks (review): every read feeding a *used* output must
    # stay inside its own sample's (Hc, Wc) canvas, so cross-slot garbage can
    # never leak into the result.
    assert o1 >= 0 and o2 >= 0
    assert o1 + (Ho1 - 1) * g1 + (k1 - 1) * d1 <= Hc - 1
    assert o1 + (Wo1 - 1) * g1 + (k1 - 1) * d1 <= Wc - 1
    assert o2 + (Ho2 - 1) * g2 + (k2 - 1) * d2 * g1 <= Hc - 1
    assert o2 + (Wo2 - 1) * g2 + (k2 - 1) * d2 * g1 <= Wc - 1
    assert Hq * pool <= Ho2 and Wq * pool <= Wo2

    step = pool * g2
    # Packed-parameter lane offsets: [ wfc canvas | W1 | W2 | b1 | b2 | b_fc ]
    OFF_WFC = 0
    OFF_W1 = Lslot
    OFF_W2 = OFF_W1 + K1
    OFF_B1 = OFF_W2 + K2
    OFF_B2 = OFF_B1 + 1
    OFF_BFC = OFF_B2 + 1
    PC = _round_up(OFF_BFC + 1, 128)

    return dict(N=N, Cin=Cin, CP=CP, k1=k1, d1=d1, k2=k2, d2=d2, pool=pool,
                g1=g1, g2=g2, Ho1=Ho1, Wo1=Wo1, Ho2=Ho2, Wo2=Wo2, Hq=Hq, Wq=Wq,
                r0=r0, Hc=Hc, Wc=Wc, o1=o1, o2=o2, step=step,
                HcWc=HcWc, Lslot=Lslot, Lc=Lc, L1=L1, L2=L2, Lx=Lx,
                K1=K1, K2=K2, OFF_WFC=OFF_WFC, OFF_W1=OFF_W1, OFF_W2=OFF_W2,
                OFF_B1=OFF_B1, OFF_B2=OFF_B2, OFF_BFC=OFF_BFC, PC=PC)


# ---------------------------- fused Pallas kernel --------------------------- #

def _wind_rnet_kernel(x_ref, prm_ref, msk_ref, o_ref,
                      xcan_ref, col1_ref, a1_ref, col2_ref, a2_ref, *, g):
    N, Cin, CP = g["N"], g["Cin"], g["CP"]
    k1, d1, k2, d2 = g["k1"], g["d1"], g["k2"], g["d2"]
    g1, g2, pool, Wc = g["g1"], g["g2"], g["pool"], g["Wc"]
    HcWc, Lslot = g["HcWc"], g["Lslot"]
    L1, L2, Lc = g["L1"], g["L2"], g["Lc"]
    K1, K2 = g["K1"], g["K2"]

    # ---- unpack the single packed small-parameter operand (one DMA) ----
    wfc = prm_ref[:, g["OFF_WFC"]:g["OFF_WFC"] + Lslot]      # (CP, Lslot)
    w1 = prm_ref[:, g["OFF_W1"]:g["OFF_W1"] + K1]            # (CP, K1)
    w2 = prm_ref[:, g["OFF_W2"]:g["OFF_W2"] + K2]            # (CP, K2)
    b1 = prm_ref[:, g["OFF_B1"]:g["OFF_B1"] + 1]             # (CP, 1)
    b2 = prm_ref[:, g["OFF_B2"]:g["OFF_B2"] + 1]             # (CP, 1)
    bfc = prm_ref[0:1, g["OFF_BFC"]:g["OFF_BFC"] + 1]        # (1, 1)

    # ---- assemble the zero-margin canvas in VMEM: channels on sublanes,
    #      batch*spatial on lanes; every sample slot is 128-lane aligned ----
    xcan_ref[...] = jnp.zeros(xcan_ref.shape, jnp.float32)
    for n in range(N):
        xcan_ref[0:Cin, n * Lslot:n * Lslot + HcWc] = x_ref[n]

    # ---- conv1: implicit im2col (each shifted window produced exactly once),
    #      then ONE fused MXU matmul with K = k1*k1*CP ----
    for t in range(k1 * k1):
        p, q = divmod(t, k1)
        s = p * d1 * Wc + q * d1
        col1_ref[t * CP:(t + 1) * CP, :] = xcan_ref[:, s:s + L1]
    z1 = jnp.dot(w1, col1_ref[...], preferred_element_type=jnp.float32)
    # bias + ReLU + conv1-valid-window mask (the mask doubles as conv2's zero pad)
    a1_ref[...] = jnp.maximum(z1 + b1, 0.0) * msk_ref[...]

    # ---- conv2: same single-matmul structure over the masked conv1 output ----
    for t in range(k2 * k2):
        p, q = divmod(t, k2)
        s = (p * d2 * Wc + q * d2) * g1
        col2_ref[t * CP:(t + 1) * CP, :] = a1_ref[:, s:s + L2]
    z2 = jnp.dot(w2, col2_ref[...], preferred_element_type=jnp.float32)
    a2_ref[...] = jnp.maximum(z2 + b2, 0.0)

    # ---- MaxPool2d: elementwise max over pool*pool shifted views (VPU) ----
    m = a2_ref[:, 0:Lc]
    for pi in range(pool):
        for pj in range(pool):
            if pi == 0 and pj == 0:
                continue
            s = (pi * Wc + pj) * g2
            m = jnp.maximum(m, a2_ref[:, s:s + Lc])

    # ---- Flatten + Linear: fc weights sit at the pooled anchor positions of a
    #      single sample slot; per-sample reduce over a 128-aligned lane slice
    #      (replaces the former O(N^2) segment matmul). ----
    for n in range(N):
        seg = m[:, n * Lslot:(n + 1) * Lslot] * wfc
        s_n = jnp.sum(jnp.sum(seg, axis=1, keepdims=True), axis=0, keepdims=True)
        o_ref[:, n:n + 1] = s_n + bfc


# ------------------------------ JAX wrapper --------------------------------- #

def wind_rnet_forward(x, params, args):
    N, Cin, H, W = x.shape
    C1, C2 = params["w1"].shape[0], params["w2"].shape[0]
    g = _geometry(args, N, Cin, C1, C2, H, W)
    CP, Lslot, HcWc = g["CP"], g["Lslot"], g["HcWc"]
    k1, k2 = g["k1"], g["k2"]
    r0, Hc, Wc = g["r0"], g["Hc"], g["Wc"]
    Hq, Wq, o2, step = g["Hq"], g["Wq"], g["o2"], g["step"]

    assert args["fc_size"] == C2 * Hq * Wq, "fc_size mismatch with conv arithmetic"
    # TODO(synk): fc path assumes the module's single output feature (Linear(fc_size, 1)).
    assert params["wfc"].shape == (1, args["fc_size"])

    f32 = jnp.float32

    # Input prep: ONLY the spatial zero-pad stays on the host (no NCHW->CNHW
    # transpose / canvas relayout); the kernel scatters each padded sample into
    # the lane-dense canvas with one aligned VMEM store.
    xpad = jnp.pad(x.astype(f32),
                   ((0, 0), (0, 0), (r0, Hc - r0 - H), (r0, Wc - r0 - W)))
    xpad = xpad.reshape(N, Cin, HcWc)

    # Pack all small parameters into a single (CP, PC) operand:
    #   [ wfc anchor-canvas | W1 (im2col layout) | W2 | b1 | b2 | b_fc ]
    w1m = jnp.transpose(params["w1"].astype(f32), (0, 2, 3, 1))            # (C1,k1,k1,Cin)
    w1m = jnp.pad(w1m, ((0, CP - C1), (0, 0), (0, 0), (0, CP - Cin)))
    w1m = w1m.reshape(CP, g["K1"])
    w2m = jnp.transpose(params["w2"].astype(f32), (0, 2, 3, 1))            # (C2,k2,k2,C1)
    w2m = jnp.pad(w2m, ((0, CP - C2), (0, 0), (0, 0), (0, CP - C1)))
    w2m = w2m.reshape(CP, g["K2"])
    b1p = jnp.pad(params["b1"].astype(f32).reshape(C1, 1), ((0, CP - C1), (0, 0)))
    b2p = jnp.pad(params["b2"].astype(f32).reshape(C2, 1), ((0, CP - C2), (0, 0)))
    bfcp = jnp.pad(params["bfc"].astype(f32).reshape(1, 1), ((0, CP - 1), (0, 0)))

    wr = params["wfc"].astype(f32).reshape(C2, Hq, Wq)
    pad_cfg = ((0, 0, 0),
               (o2, Hc - o2 - ((Hq - 1) * step + 1), step - 1),
               (o2, Wc - o2 - ((Wq - 1) * step + 1), step - 1))
    wfc_can = jax.lax.pad(wr, jnp.float32(0), pad_cfg).reshape(C2, HcWc)   # (C2, Hc*Wc)
    wfc_slot = jnp.pad(wfc_can, ((0, CP - C2), (0, Lslot - HcWc)))         # (CP, Lslot)

    prm = jnp.concatenate([wfc_slot, w1m, w2m, b1p, b2p, bfcp], axis=1)
    prm = jnp.pad(prm, ((0, 0), (0, g["PC"] - prm.shape[1])))

    # conv1-output validity mask (compile-time constant; 1 only on the true
    # conv1 output grid inside each sample's slot).
    msk2d = np.zeros((Hc, Wc), np.float32)
    msk2d[g["o1"]: g["o1"] + (g["Ho1"] - 1) * g["g1"] + 1: g["g1"],
          g["o1"]: g["o1"] + (g["Wo1"] - 1) * g["g1"] + 1: g["g1"]] = 1.0
    slot = np.zeros((Lslot,), np.float32)
    slot[:HcWc] = msk2d.reshape(-1)
    mask1 = np.zeros((1, g["L1"]), np.float32)
    mask1[0, :g["Lc"]] = np.tile(slot, N)
    mask1 = jnp.asarray(mask1)

    cost = pl.CostEstimate(
        flops=2 * CP * (g["K1"] * g["L1"] + g["K2"] * g["L2"]),
        transcendentals=0,
        bytes_accessed=4 * (xpad.size + prm.size + mask1.size + N))

    out = pl.pallas_call(
        functools.partial(_wind_rnet_kernel, g=g),
        out_shape=jax.ShapeDtypeStruct((1, N), jnp.float32),
        scratch_shapes=[pltpu.VMEM((CP, g["Lx"]), jnp.float32),          # canvas
                        pltpu.VMEM((g["K1"], g["L1"]), jnp.float32),     # conv1 im2col
                        pltpu.VMEM((CP, g["L1"]), jnp.float32),          # relu(conv1)*mask
                        pltpu.VMEM((g["K2"], g["L2"]), jnp.float32),     # conv2 im2col
                        pltpu.VMEM((CP, g["L2"]), jnp.float32)],         # relu(conv2)
        cost_estimate=cost,
    )(xpad, prm, mask1)
    return out.reshape(N, 1)


# --------------------------- pure-JAX reference ------------------------------ #

def reference_forward(x, params, args):
    def conv(x, w, b, stride, dilation, pad):
        y = jax.lax.conv_general_dilated(
            x, w, window_strides=(stride, stride),
            padding=[(pad, pad), (pad, pad)],
            rhs_dilation=(dilation, dilation),
            dimension_numbers=("NCHW", "OIHW", "NCHW"))
        return y + b.reshape(1, -1, 1, 1)

    y = jax.nn.relu(conv(x, params["w1"], params["b1"],
                         args["stride_1"], args["dilation_1"], args["k_size_1"] - 1))
    y = jax.nn.relu(conv(y, params["w2"], params["b2"],
                         args["stride_2"], args["dilation_2"], args["k_size_2"] - 1))
    p = args["maxpool_2"]
    y = jax.lax.reduce_window(y, -jnp.inf, jax.lax.max,
                              (1, 1, p, p), (1, 1, p, p), "VALID")
    y = y.reshape(y.shape[0], -1)
    return y @ params["wfc"].T + params["bfc"]


# ---------------------------------- main ------------------------------------- #

if __name__ == "__main__":
    args = {
        "in_channels": 4,
        "out_channels_1": 8, "k_size_1": 3, "stride_1": 1, "dilation_1": 1,
        "out_channels_2": 8, "k_size_2": 3, "stride_2": 1, "dilation_2": 1,
        "maxpool_2": 2,
    }
    N, H, W = 2, 16, 16

    # shape math (matches PyTorch conv/pool arithmetic) to get fc_size
    H1 = _conv_out(H, args["k_size_1"], args["stride_1"], args["dilation_1"], args["k_size_1"] - 1)
    W1 = _conv_out(W, args["k_size_1"], args["stride_1"], args["dilation_1"], args["k_size_1"] - 1)
    H2 = _conv_out(H1, args["k_size_2"], args["stride_2"], args["dilation_2"], args["k_size_2"] - 1)
    W2 = _conv_out(W1, args["k_size_2"], args["stride_2"], args["dilation_2"], args["k_size_2"] - 1)
    Hh, Wh = H2 // args["maxpool_2"], W2 // args["maxpool_2"]
    args["fc_size"] = args["out_channels_2"] * Hh * Wh

    key = jax.random.PRNGKey(0)
    kx, k1, k2, k3, k4, k5, k6 = jax.random.split(key, 7)
    x = jax.random.normal(kx, (N, args["in_channels"], H, W), jnp.float32)

    params = {
        "w1": 0.1 * jax.random.normal(
            k1, (args["out_channels_1"], args["in_channels"],
                 args["k_size_1"], args["k_size_1"]), jnp.float32),
        "b1": 0.1 * jax.random.normal(k2, (args["out_channels_1"],), jnp.float32),
        "w2": 0.1 * jax.random.normal(
            k3, (args["out_channels_2"], args["out_channels_1"],
                 args["k_size_2"], args["k_size_2"]), jnp.float32),
        "b2": 0.1 * jax.random.normal(k4, (args["out_channels_2"],), jnp.float32),
        "wfc": 0.05 * jax.random.normal(k5, (1, args["fc_size"]), jnp.float32),
        "bfc": 0.05 * jax.random.normal(k6, (1,), jnp.float32),
    }

    fwd = jax.jit(functools.partial(wind_rnet_forward, args=args))
    out = jax.block_until_ready(fwd(x, params))
    ref = jax.block_until_ready(reference_forward(x, params, args))

    assert out.shape == (N, 1), out.shape
    assert jnp.allclose(out, ref, rtol=1e-3, atol=1e-3), (out, ref)
    print("KERNEL_OK")
</pallas_src>

<mosaic_0001>
module attributes {stable_mosaic.version = 11 : i64} {
  func.func @_wind_rnet_kernel(%arg0: memref<2x4x576xf32, #tpu.memory_space<vmem>>, %arg1: memref<8x896xf32, #tpu.memory_space<vmem>>, %arg2: memref<1x1536xf32, #tpu.memory_space<vmem>>, %arg3: memref<1x2xf32, #tpu.memory_space<vmem>>, %arg4: memref<8x1664xf32, #tpu.memory_space<vmem>>, %arg5: memref<72x1536xf32, #tpu.memory_space<vmem>>, %arg6: memref<8x1536xf32, #tpu.memory_space<vmem>>, %arg7: memref<72x1408xf32, #tpu.memory_space<vmem>>, %arg8: memref<8x1408xf32, #tpu.memory_space<vmem>>) attributes {dimension_semantics = [], scalar_prefetch = 0 : i64, scratch_operands = 5 : i64, tpu.core_type = #tpu.core_type<tc>} {
    %c0 = arith.constant 0 : index
    %c0_0 = arith.constant 0 : index
    %0 = vector.load %arg1[%c0, %c0_0] : memref<8x896xf32, #tpu.memory_space<vmem>>, vector<8x640xf32>
    %c0_1 = arith.constant 0 : index
    %c640 = arith.constant 640 : index
    %1 = vector.load %arg1[%c0_1, %c640] : memref<8x896xf32, #tpu.memory_space<vmem>>, vector<8x72xf32>
    %c0_2 = arith.constant 0 : index
    %c712 = arith.constant 712 : index
    %2 = vector.load %arg1[%c0_2, %c712] : memref<8x896xf32, #tpu.memory_space<vmem>>, vector<8x72xf32>
    %c0_3 = arith.constant 0 : index
    %c784 = arith.constant 784 : index
    %3 = vector.load %arg1[%c0_3, %c784] : memref<8x896xf32, #tpu.memory_space<vmem>>, vector<8x1xf32>
    %c0_4 = arith.constant 0 : index
    %c785 = arith.constant 785 : index
    %4 = vector.load %arg1[%c0_4, %c785] : memref<8x896xf32, #tpu.memory_space<vmem>>, vector<8x1xf32>
    %c0_5 = arith.constant 0 : index
    %c786 = arith.constant 786 : index
    %5 = vector.load %arg1[%c0_5, %c786] : memref<8x896xf32, #tpu.memory_space<vmem>>, vector<1x1xf32>
    %cst = arith.constant 0.000000e+00 : f32
    %6 = vector.broadcast %cst : f32 to vector<8x1664xf32>
    %c0_6 = arith.constant 0 : index
    %c0_7 = arith.constant 0 : index
    %7 = vector.load %arg4[%c0_6, %c0_7] : memref<8x1664xf32, #tpu.memory_space<vmem>>, vector<8x1664xf32>
    tpu.vector_store %arg4[%c0_6, %c0_7], %6 {strides = array<i32>} : memref<8x1664xf32, #tpu.memory_space<vmem>>, vector<8x1664xf32>,
    %c0_8 = arith.constant 0 : index
    %c0_9 = arith.constant 0 : index
    %c0_10 = arith.constant 0 : index
    %8 = vector.load %arg0[%c0_8, %c0_9, %c0_10] : memref<2x4x576xf32, #tpu.memory_space<vmem>>, vector<1x4x576xf32>
    %9 = vector.shape_cast %8 : vector<1x4x576xf32> to vector<4x576xf32>
    %c0_11 = arith.constant 0 : index
    %c0_12 = arith.constant 0 : index
    %10 = vector.load %arg4[%c0_11, %c0_12] : memref<8x1664xf32, #tpu.memory_space<vmem>>, vector<4x576xf32>
    tpu.vector_store %arg4[%c0_11, %c0_12], %9 {strides = array<i32>} : memref<8x1664xf32, #tpu.memory_space<vmem>>, vector<4x576xf32>,
    %c1 = arith.constant 1 : index
    %c0_13 = arith.constant 0 : index
    %c0_14 = arith.constant 0 : index
    %11 = vector.load %arg0[%c1, %c0_13, %c0_14] : memref<2x4x576xf32, #tpu.memory_space<vmem>>, vector<1x4x576xf32>
    %12 = vector.shape_cast %11 : vector<1x4x576xf32> to vector<4x576xf32>
    %c0_15 = arith.constant 0 : index
    %c640_16 = arith.constant 640 : index
    %13 = vector.load %arg4[%c0_15, %c640_16] : memref<8x1664xf32, #tpu.memory_space<vmem>>, vector<4x576xf32>
    tpu.vector_store %arg4[%c0_15, %c640_16], %12 {strides = array<i32>} : memref<8x1664xf32, #tpu.memory_space<vmem>>, vector<4x576xf32>,
    %c0_17 = arith.constant 0 : index
    %c0_18 = arith.constant 0 : index
    %14 = vector.load %arg4[%c0_17, %c0_18] : memref<8x1664xf32, #tpu.memory_space<vmem>>, vector<8x1536xf32>
    %c0_19 = arith.constant 0 : index
    %c0_20 = arith.constant 0 : index
    %15 = vector.load %arg5[%c0_19, %c0_20] : memref<72x1536xf32, #tpu.memory_space<vmem>>, vector<8x1536xf32>
    tpu.vector_store %arg5[%c0_19, %c0_20], %14 {strides = array<i32>} : memref<72x1536xf32, #tpu.memory_space<vmem>>, vector<8x1536xf32>,
    %c0_21 = arith.constant 0 : index
    %c1_22 = arith.constant 1 : index
    %16 = vector.load %arg4[%c0_21, %c1_22] : memref<8x1664xf32, #tpu.memory_space<vmem>>, vector<8x1536xf32>
    %c8 = arith.constant 8 : index
    %c0_23 = arith.constant 0 : index
    %17 = vector.load %arg5[%c8, %c0_23] : memref<72x1536xf32, #tpu.memory_space<vmem>>, vector<8x1536xf32>
    tpu.vector_store %arg5[%c8, %c0_23], %16 {strides = array<i32>} : memref<72x1536xf32, #tpu.memory_space<vmem>>, vector<8x1536xf32>,
    %c0_24 = arith.constant 0 : index
    %c2 = arith.constant 2 : index
    %18 = vector.load %arg4[%c0_24, %c2] : memref<8x1664xf32, #tpu.memory_space<vmem>>, vector<8x1536xf32>
    %c16 = arith.constant 16 : index
    %c0_25 = arith.constant 0 : index
    %19 = vector.load %arg5[%c16, %c0_25] : memref<72x1536xf32, #tpu.memory_space<vmem>>, vector<8x1536xf32>
    tpu.vector_store %arg5[%c16, %c0_25], %18 {strides = array<i32>} : memref<72x1536xf32, #tpu.memory_space<vmem>>, vector<8x1536xf32>,
    %c0_26 = arith.constant 0 : index
    %c24 = arith.constant 24 : index
    %20 = vector.load %arg4[%c0_26, %c24] : memref<8x1664xf32, #tpu.memory_space<vmem>>, vector<8x1536xf32>
    %c24_27 = arith.constant 24 : index
    %c0_28 = arith.constant 0 : index
    %21 = vector.load %arg5[%c24_27, %c0_28] : memref<72x1536xf32, #tpu.memory_space<vmem>>, vector<8x1536xf32>
    tpu.vector_store %arg5[%c24_27, %c0_28], %20 {strides = array<i32>} : memref<72x1536xf32, #tpu.memory_space<vmem>>, vector<8x1536xf32>,
    %c0_29 = arith.constant 0 : index
    %c25 = arith.constant 25 : index
    %22 = vector.load %arg4[%c0_29, %c25] : memref<8x1664xf32, #tpu.memory_space<vmem>>, vector<8x1536xf32>
    %c32 = arith.constant 32 : index
    %c0_30 = arith.constant 0 : index
    %23 = vector.load %arg5[%c32, %c0_30] : memref<72x1536xf32, #tpu.memory_space<vmem>>, vector<8x1536xf32>
    tpu.vector_store %arg5[%c32, %c0_30], %22 {strides = array<i32>} : memref<72x1536xf32, #tpu.memory_space<vmem>>, vector<8x1536xf32>,
    %c0_31 = arith.constant 0 : index
    %c26 = arith.constant 26 : index
    %24 = vector.load %arg4[%c0_31, %c26] : memref<8x1664xf32, #tpu.memory_space<vmem>>, vector<8x1536xf32>
    %c40 = arith.constant 40 : index
    %c0_32 = arith.constant 0 : index
    %25 = vector.load %arg5[%c40, %c0_32] : memref<72x1536xf32, #tpu.memory_space<vmem>>, vector<8x1536xf32>
    tpu.vector_store %arg5[%c40, %c0_32], %24 {strides = array<i32>} : memref<72x1536xf32, #tpu.memory_space<vmem>>, vector<8x1536xf32>,
    %c0_33 = arith.constant 0 : index
    %c48 = arith.constant 48 : index
    %26 = vector.load %arg4[%c0_33, %c48] : memref<8x1664xf32, #tpu.memory_space<vmem>>, vector<8x1536xf32>
    %c48_34 = arith.constant 48 : index
    %c0_35 = arith.constant 0 : index
    %27 = vector.load %arg5[%c48_34, %c0_35] : memref<72x1536xf32, #tpu.memory_space<vmem>>, vector<8x1536xf32>
    tpu.vector_store %arg5[%c48_34, %c0_35], %26 {strides = array<i32>} : memref<72x1536xf32, #tpu.memory_space<vmem>>, vector<8x1536xf32>,
    %c0_36 = arith.constant 0 : index
    %c49 = arith.constant 49 : index
    %28 = vector.load %arg4[%c0_36, %c49] : memref<8x1664xf32, #tpu.memory_space<vmem>>, vector<8x1536xf32>
    %c56 = arith.constant 56 : index
    %c0_37 = arith.constant 0 : index
    %29 = vector.load %arg5[%c56, %c0_37] : memref<72x1536xf32, #tpu.memory_space<vmem>>, vector<8x1536xf32>
    tpu.vector_store %arg5[%c56, %c0_37], %28 {strides = array<i32>} : memref<72x1536xf32, #tpu.memory_space<vmem>>, vector<8x1536xf32>,
    %c0_38 = arith.constant 0 : index
    %c50 = arith.constant 50 : index
    %30 = vector.load %arg4[%c0_38, %c50] : memref<8x1664xf32, #tpu.memory_space<vmem>>, vector<8x1536xf32>
    %c64 = arith.constant 64 : index
    %c0_39 = arith.constant 0 : index
    %31 = vector.load %arg5[%c64, %c0_39] : memref<72x1536xf32, #tpu.memory_space<vmem>>, vector<8x1536xf32>
    tpu.vector_store %arg5[%c64, %c0_39], %30 {strides = array<i32>} : memref<72x1536xf32, #tpu.memory_space<vmem>>, vector<8x1536xf32>,
    %c0_40 = arith.constant 0 : index
    %c0_41 = arith.constant 0 : index
    %32 = vector.load %arg5[%c0_40, %c0_41] : memref<72x1536xf32, #tpu.memory_space<vmem>>, vector<72x1536xf32>
    %cst_42 = arith.constant dense<0.000000e+00> : vector<8x1536xf32>
    %33 = tpu.matmul %1, %32, %cst_42 {dimension_numbers = #tpu.dot_dimension_numbers<[1], [0], [0], [1], [0, 0, 1, 1], [], []>} : vector<8x72xf32>, vector<72x1536xf32>, vector<8x1536xf32> -> vector<8x1536xf32>
    %34 = vector.broadcast %3 : vector<8x1xf32> to vector<8x1536xf32>
    %35 = arith.addf %33, %34 : vector<8x1536xf32>
    %cst_43 = arith.constant 0.000000e+00 : f32
    %36 = vector.broadcast %cst_43 : f32 to vector<8x1536xf32>
    %37 = arith.maximumf %35, %36 : vector<8x1536xf32>
    %c0_44 = arith.constant 0 : index
    %c0_45 = arith.constant 0 : index
    %38 = vector.load %arg2[%c0_44, %c0_45] : memref<1x1536xf32, #tpu.memory_space<vmem>>, vector<1x1536xf32>
    %39 = vector.broadcast %38 : vector<1x1536xf32> to vector<8x1536xf32>
    %40 = arith.mulf %37, %39 : vector<8x1536xf32>
    %c0_46 = arith.constant 0 : index
    %c0_47 = arith.constant 0 : index
    %41 = vector.load %arg6[%c0_46, %c0_47] : memref<8x1536xf32, #tpu.memory_space<vmem>>, vector<8x1536xf32>
    tpu.vector_store %arg6[%c0_46, %c0_47], %40 {strides = array<i32>} : memref<8x1536xf32, #tpu.memory_space<vmem>>, vector<8x1536xf32>,
    %c0_48 = arith.constant 0 : index
    %c0_49 = arith.constant 0 : index
    %42 = vector.load %arg6[%c0_48, %c0_49] : memref<8x1536xf32, #tpu.memory_space<vmem>>, vector<8x1408xf32>
    %c0_50 = arith.constant 0 : index
    %c0_51 = arith.constant 0 : index
    %43 = vector.load %arg7[%c0_50, %c0_51] : memref<72x1408xf32, #tpu.memory_space<vmem>>, vector<8x1408xf32>
    tpu.vector_store %arg7[%c0_50, %c0_51], %42 {strides = array<i32>} : memref<72x1408xf32, #tpu.memory_space<vmem>>, vector<8x1408xf32>,
    %c0_52 = arith.constant 0 : index
    %c1_53 = arith.constant 1 : index
    %44 = vector.load %arg6[%c0_52, %c1_53] : memref<8x1536xf32, #tpu.memory_space<vmem>>, vector<8x1408xf32>
    %c8_54 = arith.constant 8 : index
    %c0_55 = arith.constant 0 : index
    %45 = vector.load %arg7[%c8_54, %c0_55] : memref<72x1408xf32, #tpu.memory_space<vmem>>, vector<8x1408xf32>
    tpu.vector_store %arg7[%c8_54, %c0_55], %44 {strides = array<i32>} : memref<72x1408xf32, #tpu.memory_space<vmem>>, vector<8x1408xf32>,
    %c0_56 = arith.constant 0 : index
    %c2_57 = arith.constant 2 : index
    %46 = vector.load %arg6[%c0_56, %c2_57] : memref<8x1536xf32, #tpu.memory_space<vmem>>, vector<8x1408xf32>
    %c16_58 = arith.constant 16 : index
    %c0_59 = arith.constant 0 : index
    %47 = vector.load %arg7[%c16_58, %c0_59] : memref<72x1408xf32, #tpu.memory_space<vmem>>, vector<8x1408xf32>
    tpu.vector_store %arg7[%c16_58, %c0_59], %46 {strides = array<i32>} : memref<72x1408xf32, #tpu.memory_space<vmem>>, vector<8x1408xf32>,
    %c0_60 = arith.constant 0 : index
    %c24_61 = arith.constant 24 : index
    %48 = vector.load %arg6[%c0_60, %c24_61] : memref<8x1536xf32, #tpu.memory_space<vmem>>, vector<8x1408xf32>
    %c24_62 = arith.constant 24 : index
    %c0_63 = arith.constant 0 : index
    %49 = vector.load %arg7[%c24_62, %c0_63] : memref<72x1408xf32, #tpu.memory_space<vmem>>, vector<8x1408xf32>
    tpu.vector_store %arg7[%c24_62, %c0_63], %48 {strides = array<i32>} : memref<72x1408xf32, #tpu.memory_space<vmem>>, vector<8x1408xf32>,
    %c0_64 = arith.constant 0 : index
    %c25_65 = arith.constant 25 : index
    %50 = vector.load %arg6[%c0_64, %c25_65] : memref<8x1536xf32, #tpu.memory_space<vmem>>, vector<8x1408xf32>
    %c32_66 = arith.constant 32 : index
    %c0_67 = arith.constant 0 : index
    %51 = vector.load %arg7[%c32_66, %c0_67] : memref<72x1408xf32, #tpu.memory_space<vmem>>, vector<8x1408xf32>
    tpu.vector_store %arg7[%c32_66, %c0_67], %50 {strides = array<i32>} : memref<72x1408xf32, #tpu.memory_space<vmem>>, vector<8x1408xf32>,
    %c0_68 = arith.constant 0 : index
    %c26_69 = arith.constant 26 : index
    %52 = vector.load %arg6[%c0_68, %c26_69] : memref<8x1536xf32, #tpu.memory_space<vmem>>, vector<8x1408xf32>
    %c40_70 = arith.constant 40 : index
    %c0_71 = arith.constant 0 : index
    %53 = vector.load %arg7[%c40_70, %c0_71] : memref<72x1408xf32, #tpu.memory_space<vmem>>, vector<8x1408xf32>
    tpu.vector_store %arg7[%c40_70, %c0_71], %52 {strides = array<i32>} : memref<72x1408xf32, #tpu.memory_space<vmem>>, vector<8x1408xf32>,
    %c0_72 = arith.constant 0 : index
    %c48_73 = arith.constant 48 : index
    %54 = vector.load %arg6[%c0_72, %c48_73] : memref<8x1536xf32, #tpu.memory_space<vmem>>, vector<8x1408xf32>
    %c48_74 = arith.constant 48 : index
    %c0_75 = arith.constant 0 : index
    %55 = vector.load %arg7[%c48_74, %c0_75] : memref<72x1408xf32, #tpu.memory_space<vmem>>, vector<8x1408xf32>
    tpu.vector_store %arg7[%c48_74, %c0_75], %54 {strides = array<i32>} : memref<72x1408xf32, #tpu.memory_space<vmem>>, vector<8x1408xf32>,
    %c0_76 = arith.constant 0 : index
    %c49_77 = arith.constant 49 : index
    %56 = vector.load %arg6[%c0_76, %c49_77] : memref<8x1536xf32, #tpu.memory_space<vmem>>, vector<8x1408xf32>
    %c56_78 = arith.constant 56 : index
    %c0_79 = arith.constant 0 : index
    %57 = vector.load %arg7[%c56_78, %c0_79] : memref<72x1408xf32, #tpu.memory_space<vmem>>, vector<8x1408xf32>
    tpu.vector_store %arg7[%c56_78, %c0_79], %56 {strides = array<i32>} : memref<72x1408xf32, #tpu.memory_space<vmem>>, vector<8x1408xf32>,
    %c0_80 = arith.constant 0 : index
    %c50_81 = arith.constant 50 : index
    %58 = vector.load %arg6[%c0_80, %c50_81] : memref<8x1536xf32, #tpu.memory_space<vmem>>, vector<8x1408xf32>
    %c64_82 = arith.constant 64 : index
    %c0_83 = arith.constant 0 : index
    %59 = vector.load %arg7[%c64_82, %c0_83] : memref<72x1408xf32, #tpu.memory_space<vmem>>, vector<8x1408xf32>
    tpu.vector_store %arg7[%c64_82, %c0_83], %58 {strides = array<i32>} : memref<72x1408xf32, #tpu.memory_space<vmem>>, vector<8x1408xf32>,
    %c0_84 = arith.constant 0 : index
    %c0_85 = arith.constant 0 : index
    %60 = vector.load %arg7[%c0_84, %c0_85] : memref<72x1408xf32, #tpu.memory_space<vmem>>, vector<72x1408xf32>
    %cst_86 = arith.constant dense<0.000000e+00> : vector<8x1408xf32>
    %61 = tpu.matmul %2, %60, %cst_86 {dimension_numbers = #tpu.dot_dimension_numbers<[1], [0], [0], [1], [0, 0, 1, 1], [], []>} : vector<8x72xf32>, vector<72x1408xf32>, vector<8x1408xf32> -> vector<8x1408xf32>
    %62 = vector.broadcast %4 : vector<8x1xf32> to vector<8x1408xf32>
    %63 = arith.addf %61, %62 : vector<8x1408xf32>
    %cst_87 = arith.constant 0.000000e+00 : f32
    %64 = vector.broadcast %cst_87 : f32 to vector<8x1408xf32>
    %65 = arith.maximumf %63, %64 : vector<8x1408xf32>
    %c0_88 = arith.constant 0 : index
    %c0_89 = arith.constant 0 : index
    %66 = vector.load %arg8[%c0_88, %c0_89] : memref<8x1408xf32, #tpu.memory_space<vmem>>, vector<8x1408xf32>
    tpu.vector_store %arg8[%c0_88, %c0_89], %65 {strides = array<i32>} : memref<8x1408xf32, #tpu.memory_space<vmem>>, vector<8x1408xf32>,
    %c0_90 = arith.constant 0 : index
    %c0_91 = arith.constant 0 : index
    %67 = vector.load %arg8[%c0_90, %c0_91] : memref<8x1408xf32, #tpu.memory_space<vmem>>, vector<8x1280xf32>
    %c0_92 = arith.constant 0 : index
    %c1_93 = arith.constant 1 : index
    %68 = vector.load %arg8[%c0_92, %c1_93] : memref<8x1408xf32, #tpu.memory_space<vmem>>, vector<8x1280xf32>
    %69 = arith.maximumf %67, %68 : vector<8x1280xf32>
    %c0_94 = arith.constant 0 : index
    %c24_95 = arith.constant 24 : index
    %70 = vector.load %arg8[%c0_94, %c24_95] : memref<8x1408xf32, #tpu.memory_space<vmem>>, vector<8x1280xf32>
    %71 = arith.maximumf %69, %70 : vector<8x1280xf32>
    %c0_96 = arith.constant 0 : index
    %c25_97 = arith.constant 25 : index
    %72 = vector.load %arg8[%c0_96, %c25_97] : memref<8x1408xf32, #tpu.memory_space<vmem>>, vector<8x1280xf32>
    %73 = arith.maximumf %71, %72 : vector<8x1280xf32>
    %74 = vector.extract_strided_slice %73 {offsets = [0, 0], sizes = [8, 640], strides = [1, 1]} : vector<8x1280xf32> to vector<8x640xf32>
    %75 = arith.mulf %74, %0 : vector<8x640xf32>
    %cst_98 = arith.constant dense<0.000000e+00> : vector<8xf32>
    %76 = vector.multi_reduction <add>, %75, %cst_98 [1] : vector<8x640xf32> to vector<8xf32>
    %77 = vector.shape_cast %76 : vector<8xf32> to vector<8x1xf32>
    %cst_99 = arith.constant dense<0.000000e+00> : vector<1xf32>
    %78 = vector.multi_reduction <add>, %77, %cst_99 [0] : vector<8x1xf32> to vector<1xf32>
    %79 = vector.shape_cast %78 : vector<1xf32> to vector<1x1xf32>
    %80 = arith.addf %79, %5 : vector<1x1xf32>
    %c0_100 = arith.constant 0 : index
    %c0_101 = arith.constant 0 : index
    %81 = vector.load %arg3[%c0_100, %c0_101] : memref<1x2xf32, #tpu.memory_space<vmem>>, vector<1x1xf32>
    tpu.vector_store %arg3[%c0_100, %c0_101], %80 {strides = array<i32>} : memref<1x2xf32, #tpu.memory_space<vmem>>, vector<1x1xf32>,
    %82 = vector.extract_strided_slice %73 {offsets = [0, 640], sizes = [8, 640], strides = [1, 1]} : vector<8x1280xf32> to vector<8x640xf32>
    %83 = arith.mulf %82, %0 : vector<8x640xf32>
    %cst_102 = arith.constant dense<0.000000e+00> : vector<8xf32>
    %84 = vector.multi_reduction <add>, %83, %cst_102 [1] : vector<8x640xf32> to vector<8xf32>
    %85 = vector.shape_cast %84 : vector<8xf32> to vector<8x1xf32>
    %cst_103 = arith.constant dense<0.000000e+00> : vector<1xf32>
    %86 = vector.multi_reduction <add>, %85, %cst_103 [0] : vector<8x1xf32> to vector<1xf32>
    %87 = vector.shape_cast %86 : vector<1xf32> to vector<1x1xf32>
    %88 = arith.addf %87, %5 : vector<1x1xf32>
    %c0_104 = arith.constant 0 : index
    %c1_105 = arith.constant 1 : index
    %89 = vector.load %arg3[%c0_104, %c1_105] : memref<1x2xf32, #tpu.memory_space<vmem>>, vector<1x1xf32>
    tpu.vector_store %arg3[%c0_104, %c1_105], %88 {strides = array<i32>} : memref<1x2xf32, #tpu.memory_space<vmem>>, vector<1x1xf32>,
    return
  }
}

</mosaic_0001>

<bundles_post_ra>
// kernel: wind_rnet_forward.1
= control target key start
LH: loop header
LB: loop body
LE: loop exit
PB: predicated region body
PF: predicated region fallthrough
CT: control target
= control target key end

     0   :  { %vm50_vm0 = vcmask 519168   ;;  %v3056_v2 = vmov 0.0   ;;  %s4254_s0 = inlined_call_operand.vmem [shape: f32[2,4,576], index: 0, kind: input, shape index: {}]   ;;  %s4255_s1 = inlined_call_operand.vmem [shape: f32[8,896], index: 1, kind: input, shape index: {}]   ;;  %s4256_s2 = inlined_call_operand.vmem [shape: f32[1,1536], index: 2, kind: input, shape index: {}]   ;;  %s4257_s3 = inlined_call_operand.hbm [shape: f32[1,2], index: 3, kind: output, shape index: {}]  }
   0x1   :  { %v38_v0 = vld [vmem:[%s4254_s0 + $0x8] sm:$0xff]  ;;  %v37_v1 = vld [vmem:[%s4254_s0] sm:$0xff]  ;;  %26 = vst [vmem:[#allocation2 + $0x10] sm:$0xff] %v3056_v2  ;;  %24 = vst [vmem:[#allocation2] sm:$0xff] %v3056_v2  ;;  %984 = vmatprep.mubr.f32.mxu0 %v3056_v2  ;;  %1055 = vmatprep.mubr.f32.mxu1 %v3056_v2 }
   0x2   :  { %v43_v3 = vcombine.high %v38_v0, %v38_v0  ;;  %25 = vst [vmem:[#allocation2 + $0x8] sm:$0xff] %v3056_v2  ;;  %27 = vst [vmem:[#allocation2 + $0x18] sm:$0xff] %v3056_v2  ;;  %v42_v4 = vcombine.high %v37_v1, %v37_v1  ;;  %v39_v5 = vld [vmem:[%s4254_s0 + $0x10] sm:$0xf]  ;;  %v2925_v6 = vld [vmem:[%s4254_s0 + $0x14] sm:$0xff] }
   0x3   :  { %28 = vst [vmem:[#allocation2 + $0x20] sm:$0xff] %v3056_v2  ;;  %29 = vst [vmem:[#allocation2 + $0x28] sm:$0xff] %v3056_v2  ;;  %v2926_v7 = vld [vmem:[%s4254_s0 + $0x1c] sm:$0xff]  ;;  %v58_v8 = vcombine.high %v2925_v6, %v2925_v6  ;;  %v2927_v10 = vld [vmem:[%s4254_s0 + $0x24] sm:$0xf] }
   0x4   :  { %30 = vst [vmem:[#allocation2 + $0x30] sm:$0xff] %v3056_v2  ;;  %31 = vst [vmem:[#allocation2 + $0x38] sm:$0xff] %v3056_v2  ;;  %v59_v9 = vcombine.high %v2926_v7, %v2926_v7 }
   0x5   :  { %32 = vst [vmem:[#allocation2 + $0x40] sm:$0xff] %v3056_v2  ;;  %33 = vst [vmem:[#allocation2 + $0x48] sm:$0xff] %v3056_v2 }
   0x6   :  { %34 = vst [vmem:[#allocation2 + $0x50] sm:$0xff] %v3056_v2  ;;  %48 = vst [vmem:[#allocation2 + $0x10] sm:$0xf] %v38_v0 }
   0x7   :  { %46 = vst [vmem:[#allocation2] sm:$0xf] %v37_v1  ;;  %51 = vst.msk [vmem:[#allocation2 + $0x20] sm:$0xf] %vm50_vm0, %v39_v5 }
   0x8   :  { %62 = vst [vmem:[#allocation2 + $0x28] sm:$0xf] %v2925_v6  ;;  %64 = vst [vmem:[#allocation2 + $0x38] sm:$0xf] %v2926_v7 }
   0x9   :  { %8 = vsyncpa [#allocation8], 0  ;;  %47 = vst [vmem:[#allocation2 + $0x8] sm:$0xf] %v42_v4  ;;  %s3057_s24 = smov 78   ;;  %s3058_s25 = smov 79  }
   0xa   :  { %49 = vst [vmem:[#allocation2 + $0x18] sm:$0xf] %v43_v3  ;;  %66 = vst.msk [vmem:[#allocation2 + $0x48] sm:$0xf] %vm50_vm0, %v2927_v10  ;;  %s3059_s0 = smov 80   ;;  %s3060_s26 = smov 102  }
   0xb   :  { %63 = vst [vmem:[#allocation2 + $0x30] sm:$0xf] %v58_v8  ;;  %65 = vst [vmem:[#allocation2 + $0x40] sm:$0xf] %v59_v9  ;;  %s3061_s27 = smov 103   ;;  %s3062_s28 = smov 104  }
   0xc   :  { %s3063_s29 = smov 126   ;;  %s3064_s30 = smov 127   ;;  %vm766_vm1 = vcmask 637952   ;;  %vm677_vm2 = vcmask 646144   ;;  %vm588_vm3 = vcmask 654336   ;;  %vm499_vm4 = vcmask 834560  }
   0xd   :  { %v3125_v11 = vld [vmem:[#allocation2 + $0x10] sm:$0xff]  ;;  %vm410_vm5 = vcmask 842752   ;;  %vm321_vm6 = vcmask 850944   ;;  %vm232_vm7 = vcmask 1031168   ;;  %v3065_v54 = vmov 16   ;;  %v3364_v7 = vld [vmem:[%s4255_s1 + $0x28] sm:$0xff] }
   0xe   :  { %v3127_v12 = vld [vmem:[#allocation2] sm:$0xff]  ;;  %744 = vrot.lane.b32.xlu0 %v3125_v11, %s3057_s24  ;;  %vm143_vm8 = vcmask 1039360   ;;  %vm916_vm9 = vcmask 588800   ;;  %s3066_s8 = smov 56   ;;  %vm2224_vm10 = vcmask 457728   ;;  %vm3068_vm11 = vmmov 0  }
   0xf   :  { %740 = vrot.lane.b32.xlu1 %v3127_v12, %s3057_s24  ;;  %v3181_v15 = vld [vmem:[#allocation2 + $0x20] sm:$0xff]  ;;  %v3195_v16 = vld [vmem:[#allocation2 + $0x28] sm:$0xff]  ;;  %v3251_v18 = vld [vmem:[#allocation2 + $0x38] sm:$0xff]  ;;  %3027 = vset.pattern.permute.xlu0 %v3065_v54  ;;  %vm2885_vm12 = vcmask 0   ;;  %vm2909_vm13 = vcmask 8200  }
  0x10   :  { %v3137_v13 = vld [vmem:[#allocation2 + $0x8] sm:$0xff] }
  0x11   :  { %v3175_v14 = vld [vmem:[#allocation2 + $0x18] sm:$0xff]  ;;  %v3271_v24 = vld [vmem:[#allocation2 + $0x48] sm:$0xff] }
  0x12   :  { %655 = vrot.lane.b32.xlu0 %v3125_v11, %s3058_s25  ;;  %v3197_v17 = vld [vmem:[#allocation2 + $0x30] sm:$0xff]  ;;  %v3253_v19 = vld [vmem:[#allocation2 + $0x40] sm:$0xff] }
  0x13   :  { %651 = vrot.lane.b32.xlu1 %v3127_v12, %s3058_s25 }
  0x16   :  { %742 = vrot.lane.b32.xlu0 %v3137_v13, %s3057_s24 }
  0x17   :  { %653 = vrot.lane.b32.xlu1 %v3137_v13, %s3058_s25 }
  0x1a   :  { %564 = vrot.lane.b32.xlu0 %v3137_v13, %s3059_s0 }
  0x1b   :  { %566 = vrot.lane.b32.xlu1 %v3125_v11, %s3059_s0 }
  0x1e   :  { %562 = vrot.lane.b32.xlu0 %v3127_v12, %s3059_s0 }
  0x1f   :  { %475 = vrot.lane.b32.xlu1 %v3137_v13, %s3060_s26 }
  0x22   :  { %477 = vrot.lane.b32.xlu0 %v3125_v11, %s3060_s26 }
  0x23   :  { %473 = vrot.lane.b32.xlu1 %v3127_v12, %s3060_s26 }
  0x26   :  { %386 = vrot.lane.b32.xlu0 %v3137_v13, %s3061_s27 }
  0x27   :  { %388 = vrot.lane.b32.xlu1 %v3125_v11, %s3061_s27 }
  0x2a   :  { %384 = vrot.lane.b32.xlu0 %v3127_v12, %s3061_s27 }
  0x2b   :  { %297 = vrot.lane.b32.xlu1 %v3137_v13, %s3062_s28 }
  0x2e   :  { %299 = vrot.lane.b32.xlu0 %v3125_v11, %s3062_s28 }
  0x2f   :  { %295 = vrot.lane.b32.xlu1 %v3127_v12, %s3062_s28 }
  0x32   :  { %208 = vrot.lane.b32.xlu0 %v3137_v13, %s3063_s29 }
  0x33   :  { %210 = vrot.lane.b32.xlu1 %v3125_v11, %s3063_s29 }
  0x36   :  { %206 = vrot.lane.b32.xlu0 %v3127_v12, %s3063_s29 }
  0x37   :  { %119 = vrot.lane.b32.xlu1 %v3137_v13, %s3064_s30 }
  0x3a   :  { %121 = vrot.lane.b32.xlu0 %v3125_v11, %s3064_s30 }
  0x3b   :  { %746 = vrot.lane.b32.xlu1 %v3175_v14, %s3057_s24 }
  0x3e   :  { %748 = vrot.lane.b32.xlu0 %v3181_v15, %s3057_s24 }
  0x3f   :  { %117 = vrot.lane.b32.xlu1 %v3127_v12, %s3064_s30 }
  0x42   :  { %657 = vrot.lane.b32.xlu0 %v3175_v14, %s3058_s25 }
  0x43   :  { %659 = vrot.lane.b32.xlu1 %v3181_v15, %s3058_s25 }
  0x46   :  { %568 = vrot.lane.b32.xlu0 %v3175_v14, %s3059_s0 }
  0x47   :  { %570 = vrot.lane.b32.xlu1 %v3181_v15, %s3059_s0 }
  0x4a   :  { %750 = vrot.lane.b32.xlu0 %v3195_v16, %s3057_s24 }
  0x4b   :  { %752 = vrot.lane.b32.xlu1 %v3197_v17, %s3057_s24 }
  0x4e   :  { %479 = vrot.lane.b32.xlu0 %v3175_v14, %s3060_s26 }
  0x4f   :  { %481 = vrot.lane.b32.xlu1 %v3181_v15, %s3060_s26 }
  0x52   :  { %661 = vrot.lane.b32.xlu0 %v3195_v16, %s3058_s25 }
  0x53   :  { %663 = vrot.lane.b32.xlu1 %v3197_v17, %s3058_s25 }
  0x56   :  { %390 = vrot.lane.b32.xlu0 %v3175_v14, %s3061_s27 }
  0x57   :  { %392 = vrot.lane.b32.xlu1 %v3181_v15, %s3061_s27 }
  0x5a   :  { %572 = vrot.lane.b32.xlu0 %v3195_v16, %s3059_s0 }
  0x5b   :  { %574 = vrot.lane.b32.xlu1 %v3197_v17, %s3059_s0 }
  0x5e   :  { %301 = vrot.lane.b32.xlu0 %v3175_v14, %s3062_s28 }
  0x5f   :  { %303 = vrot.lane.b32.xlu1 %v3181_v15, %s3062_s28 }
  0x62   :  { %483 = vrot.lane.b32.xlu0 %v3195_v16, %s3060_s26 }
  0x63   :  { %485 = vrot.lane.b32.xlu1 %v3197_v17, %s3060_s26 }
  0x66   :  { %212 = vrot.lane.b32.xlu0 %v3175_v14, %s3063_s29 }
  0x67   :  { %214 = vrot.lane.b32.xlu1 %v3181_v15, %s3063_s29 }
  0x6a   :  { %394 = vrot.lane.b32.xlu0 %v3195_v16, %s3061_s27 }
  0x6b   :  { %396 = vrot.lane.b32.xlu1 %v3197_v17, %s3061_s27 }
  0x6e   :  { %123 = vrot.lane.b32.xlu0 %v3175_v14, %s3064_s30 }
  0x6f   :  { %125 = vrot.lane.b32.xlu1 %v3181_v15, %s3064_s30 }
  0x72   :  { %305 = vrot.lane.b32.xlu0 %v3195_v16, %s3062_s28 }
  0x73   :  { %307 = vrot.lane.b32.xlu1 %v3197_v17, %s3062_s28 }
  0x76   :  { %216 = vrot.lane.b32.xlu0 %v3195_v16, %s3063_s29 }
  0x77   :  { %218 = vrot.lane.b32.xlu1 %v3197_v17, %s3063_s29 }
  0x7a   :  { %127 = vrot.lane.b32.xlu0 %v3195_v16, %s3064_s30 }
  0x7b   :  { %129 = vrot.lane.b32.xlu1 %v3197_v17, %s3064_s30 }
  0x7e   :  { %754 = vrot.lane.b32.xlu0 %v3251_v18, %s3057_s24 }
  0x7f   :  { %756 = vrot.lane.b32.xlu1 %v3253_v19, %s3057_s24 }
  0x80   :  { %v3259_v20 = vpop.permute.xlu0 %744 }
  0x81   :  { %v741_v21 = vpop.permute.xlu1 %740 }
  0x82   :  { %665 = vrot.lane.b32.xlu0 %v3251_v18, %s3058_s25 }
  0x83   :  { %667 = vrot.lane.b32.xlu1 %v3253_v19, %s3058_s25 }
  0x84   :  { %v3265_v22 = vpop.permute.xlu0 %655 }
  0x85   :  { %v652_v23 = vpop.permute.xlu1 %651 }
  0x86   :  { %576 = vrot.lane.b32.xlu0 %v3251_v18, %s3059_s0 }
  0x87   :  { %578 = vrot.lane.b32.xlu1 %v3253_v19, %s3059_s0 }
  0x88   :  { %v743_v25 = vpop.permute.xlu0 %742 }
  0x89   :  { %v654_v26 = vpop.permute.xlu1 %653  ;;  %v768_v27 = vsel %vm766_vm1, %v743_v25, %v3259_v20  ;;  %v767_v28 = vsel %vm766_vm1, %v741_v21, %v743_v25 }
  0x8a   :  { %934 = vmatprep.subr.mxu0 %v768_v27  ;;  %758 = vrot.lane.b32.xlu0 %v3271_v24, %s3057_s24  ;;  %v679_v29 = vsel %vm677_vm2, %v654_v26, %v3265_v22  ;;  %v678_v32 = vsel %vm677_vm2, %v652_v23, %v654_v26 }
  0x8b   :  { %2988 = vrot.lane.b32.xlu1 %v3056_v2, %s3057_s24  ;;  %935 = vmatpush1.msra.mxu0 %v767_v28 }
  0x8c   :  { %v565_v30 = vpop.permute.xlu0 %564  ;;  %936 = vmatprep.subr.mxu0 %v679_v29 }
  0x8d   :  { %v3282_v31 = vpop.permute.xlu1 %566  ;;  %937 = vmatpush1.msra.mxu0 %v678_v32 }
  0x8e   :  { %v590_v33 = vsel %vm588_vm3, %v565_v30, %v3282_v31  ;;  %487 = vrot.lane.b32.xlu0 %v3251_v18, %s3060_s26 }
  0x8f   :  { %938 = vmatprep.subr.mxu0 %v590_v33  ;;  %489 = vrot.lane.b32.xlu1 %v3253_v19, %s3060_s26 }
  0x90   :  { %v563_v35 = vpop.permute.xlu0 %562 }
  0x91   :  { %v476_v34 = vpop.permute.xlu1 %475  ;;  %v589_v36 = vsel %vm588_vm3, %v563_v35, %v565_v30 }
  0x92   :  { %939 = vmatpush1.msra.mxu0 %v589_v36  ;;  %669 = vrot.lane.b32.xlu0 %v3271_v24, %s3058_s25  ;;  %v3415_v36 = vld [vmem:[%s4255_s1 + $0x30] sm:$0xff] }
  0x93   :  { %2993 = vrot.lane.b32.xlu1 %v3056_v2, %s3058_s25 }
  0x94   :  { %v3296_v37 = vpop.permute.xlu0 %477 }
  0x95   :  { %v474_v38 = vpop.permute.xlu1 %473  ;;  %v501_v39 = vsel %vm499_vm4, %v476_v34, %v3296_v37 }
  0x96   :  { %v500_v40 = vsel %vm499_vm4, %v474_v38, %v476_v34  ;;  %940 = vmatprep.subr.mxu0 %v501_v39  ;;  %398 = vrot.lane.b32.xlu0 %v3251_v18, %s3061_s27 }
  0x97   :  { %400 = vrot.lane.b32.xlu1 %v3253_v19, %s3061_s27  ;;  %941 = vmatpush1.msra.mxu0 %v500_v40 }
  0x98   :  { %v387_v41 = vpop.permute.xlu0 %386 }
  0x99   :  { %v3305_v42 = vpop.permute.xlu1 %388 }
  0x9a   :  { %v412_v43 = vsel %vm410_vm5, %v387_v41, %v3305_v42  ;;  %580 = vrot.lane.b32.xlu0 %v3271_v24, %s3059_s0 }
  0x9b   :  { %942 = vmatprep.subr.mxu0 %v412_v43  ;;  %582 = vrot.lane.b32.xlu1 %v3056_v2, %s3059_s0 }
  0x9c   :  { %v385_v45 = vpop.permute.xlu0 %384 }
  0x9d   :  { %v298_v44 = vpop.permute.xlu1 %297  ;;  %v411_v46 = vsel %vm410_vm5, %v385_v45, %v387_v41 }
  0x9e   :  { %943 = vmatpush1.msra.mxu0 %v411_v46  ;;  %309 = vrot.lane.b32.xlu0 %v3251_v18, %s3062_s28 }
  0x9f   :  { %311 = vrot.lane.b32.xlu1 %v3253_v19, %s3062_s28 }
  0xa0   :  { %v3318_v47 = vpop.permute.xlu0 %299 }
  0xa1   :  { %v296_v48 = vpop.permute.xlu1 %295  ;;  %v323_v49 = vsel %vm321_vm6, %v298_v44, %v3318_v47 }
  0xa2   :  { %v322_v50 = vsel %vm321_vm6, %v296_v48, %v298_v44  ;;  %944 = vmatprep.subr.mxu0 %v323_v49  ;;  %491 = vrot.lane.b32.xlu0 %v3271_v24, %s3060_s26 }
  0xa3   :  { %493 = vrot.lane.b32.xlu1 %v3056_v2, %s3060_s26  ;;  %945 = vmatpush1.msra.mxu0 %v322_v50 }
  0xa4   :  { %v209_v51 = vpop.permute.xlu0 %208 }
  0xa5   :  { %v3327_v52 = vpop.permute.xlu1 %210 }
  0xa6   :  { %v234_v53 = vsel %vm232_vm7, %v209_v51, %v3327_v52  ;;  %220 = vrot.lane.b32.xlu0 %v3251_v18, %s3063_s29 }
  0xa7   :  { %946 = vmatprep.subr.mxu0 %v234_v53  ;;  %222 = vrot.lane.b32.xlu1 %v3253_v19, %s3063_s29 }
  0xa8   :  { %v207_v56 = vpop.permute.xlu0 %206 }
  0xa9   :  { %v120_v55 = vpop.permute.xlu1 %119  ;;  %v233_v57 = vsel %vm232_vm7, %v207_v56, %v209_v51 }
  0xaa   :  { %402 = vrot.lane.b32.xlu0 %v3271_v24, %s3061_s27  ;;  %947 = vmatpush1.msra.mxu0 %v233_v57 }
  0xab   :  { %404 = vrot.lane.b32.xlu1 %v3056_v2, %s3061_s27 }
  0xac   :  { %v3340_v59 = vpop.permute.xlu0 %121 }
  0xad   :  { %v747_v58 = vpop.permute.xlu1 %746  ;;  %v145_v60 = vsel %vm143_vm8, %v120_v55, %v3340_v59 }
  0xae   :  { %131 = vrot.lane.b32.xlu0 %v3251_v18, %s3064_s30  ;;  %948 = vmatprep.subr.mxu0 %v145_v60  ;;  %v769_v1 = vsel %vm766_vm1, %v3259_v20, %v747_v58 }
  0xaf   :  { %133 = vrot.lane.b32.xlu1 %v3253_v19, %s3064_s30 }
  0xb0   :  { %v749_v61 = vpop.permute.xlu0 %748 }
  0xb1   :  { %v118_v62 = vpop.permute.xlu1 %117  ;;  %v770_v63 = vsel %vm766_vm1, %v747_v58, %v749_v61 }
  0xb2   :  { %v144_v0 = vsel %vm143_vm8, %v118_v62, %v120_v55  ;;  %313 = vrot.lane.b32.xlu0 %v3271_v24, %s3062_s28  ;;  %1005 = vmatprep.subr.mxu1 %v770_v63 }
  0xb3   :  { %315 = vrot.lane.b32.xlu1 %v3056_v2, %s3062_s28  ;;  %949 = vmatpush1.msra.mxu0 %v144_v0 }
  0xb4   :  { %1006 = vmatpush1.msra.mxu1 %v769_v1  ;;  %v658_v3 = vpop.permute.xlu0 %657  ;;  %950 = vmatprep.subr.mxu0 %v3137_v13 }
  0xb5   :  { %v660_v4 = vpop.permute.xlu1 %659  ;;  %v680_v6 = vsel %vm677_vm2, %v3265_v22, %v658_v3  ;;  %951 = vmatpush1.msra.mxu0 %v3127_v12 }
  0xb6   :  { %v681_v5 = vsel %vm677_vm2, %v658_v3, %v660_v4  ;;  %224 = vrot.lane.b32.xlu0 %v3271_v24, %s3063_s29  ;;  %2928 = vmatmul.mubr.msk.f32.vlgmr.msra.gmra.mxu0 %vm916_vm9, %v3364_v7 }
  0xb7   :  { %1007 = vmatprep.subr.mxu1 %v681_v5  ;;  %226 = vrot.lane.b32.xlu1 %v3056_v2, %s3063_s29 }
  0xb8   :  { %1008 = vmatpush1.msra.mxu1 %v680_v6  ;;  %v569_v8 = vpop.permute.xlu0 %568  ;;  %1126 = vmatprep.mubr.f32.mxu0 %v3056_v2 }
  0xb9   :  { %v571_v9 = vpop.permute.xlu1 %570  ;;  %v591_v12 = vsel %vm588_vm3, %v3282_v31, %v569_v8 }
  0xba   :  { %v592_v10 = vsel %vm588_vm3, %v569_v8, %v571_v9  ;;  %135 = vrot.lane.b32.xlu0 %v3271_v24, %s3064_s30 }
  0xbb   :  { %1009 = vmatprep.subr.mxu1 %v592_v10  ;;  %137 = vrot.lane.b32.xlu1 %v3056_v2, %s3064_s30 }
  0xbc   :  { %1010 = vmatpush1.msra.mxu1 %v591_v12  ;;  %v751_v13 = vpop.permute.xlu0 %750 }
  0xbd   :  { %v3380_v20 = vpop.permute.xlu1 %752  ;;  %v771_v22 = vsel %vm766_vm1, %v749_v61, %v751_v13 }
  0xbe   :  { %v772_v21 = vsel %vm766_vm1, %v751_v13, %v3380_v20  ;;  %764 = vrot.lane.b32.xlu0 %v3056_v2, %s3057_s24 }
  0xbf   :  { %1076 = vmatprep.subr.mxu0 %v772_v21  ;;  %675 = vrot.lane.b32.xlu1 %v3056_v2, %s3058_s25 }
  0xc0   :  { %1077 = vmatpush1.msra.mxu0 %v771_v22  ;;  %v480_v23 = vpop.permute.xlu0 %479 }
  0xc1   :  { %v482_v25 = vpop.permute.xlu1 %481  ;;  %v502_v27 = vsel %vm499_vm4, %v3296_v37, %v480_v23 }
  0xc2   :  { %v503_v26 = vsel %vm499_vm4, %v480_v23, %v482_v25  ;;  %2998 = vrot.lane.b32.xlu0 %v3056_v2, %s3059_s0 }
  0xc3   :  { %1011 = vmatprep.subr.mxu1 %v503_v26  ;;  %3003 = vrot.lane.b32.xlu1 %v3056_v2, %s3060_s26 }
  0xc4   :  { %1012 = vmatpush1.msra.mxu1 %v502_v27  ;;  %v662_v28 = vpop.permute.xlu0 %661 }
  0xc5   :  { %v3396_v29 = vpop.permute.xlu1 %663  ;;  %v682_v31 = vsel %vm677_vm2, %v660_v4, %v662_v28 }
  0xc6   :  { %v683_v30 = vsel %vm677_vm2, %v662_v28, %v3396_v29  ;;  %3008 = vrot.lane.b32.xlu0 %v3056_v2, %s3061_s27 }
  0xc7   :  { %1078 = vmatprep.subr.mxu0 %v683_v30  ;;  %3013 = vrot.lane.b32.xlu1 %v3056_v2, %s3062_s28 }
  0xc8   :  { %1079 = vmatpush1.msra.mxu0 %v682_v31  ;;  %v391_v32 = vpop.permute.xlu0 %390 }
  0xc9   :  { %v393_v33 = vpop.permute.xlu1 %392  ;;  %v413_v35 = vsel %vm410_vm5, %v3305_v42, %v391_v32 }
  0xca   :  { %v414_v34 = vsel %vm410_vm5, %v391_v32, %v393_v33  ;;  %3018 = vrot.lane.b32.xlu0 %v3056_v2, %s3063_s29 }
  0xcb   :  { %1013 = vmatprep.subr.mxu1 %v414_v34  ;;  %3023 = vrot.lane.b32.xlu1 %v3056_v2, %s3064_s30 }
  0xcc   :  { %1014 = vmatpush1.msra.mxu1 %v413_v35  ;;  %v573_v37 = vpop.permute.xlu0 %572 }
  0xcd   :  { %v3417_v38 = vpop.permute.xlu1 %574  ;;  %v593_v40 = vsel %vm588_vm3, %v571_v9, %v573_v37 }
  0xce   :  { %v594_v39 = vsel %vm588_vm3, %v573_v37, %v3417_v38  ;;  %913 = vperm.xlu0 %3027, %v3415_v36  }
  0xcf   :  { %1080 = vmatprep.subr.mxu0 %v594_v39  ;;  %2222 = vrot.lane.b32.xlu1 %v3415_v36, %s3066_s8 }
  0xd0   :  { %1081 = vmatpush1.msra.mxu0 %v593_v40  ;;  %v302_v41 = vpop.permute.xlu0 %301 }
  0xd1   :  { %v304_v42 = vpop.permute.xlu1 %303  ;;  %v324_v44 = vsel %vm321_vm6, %v3318_v47, %v302_v41 }
  0xd2   :  { %v325_v43 = vsel %vm321_vm6, %v302_v41, %v304_v42  ;;  %2220 = vrot.lane.b32.xlu0 %v3364_v7, %s3066_s8 }
  0xd3   :  { %1015 = vmatprep.subr.mxu1 %v325_v43 }
  0xd4   :  { %1016 = vmatpush1.msra.mxu1 %v324_v44  ;;  %v484_v45 = vpop.permute.xlu0 %483 }
  0xd5   :  { %v3426_v46 = vpop.permute.xlu1 %485  ;;  %v504_v49 = vsel %vm499_vm4, %v482_v25, %v484_v45 }
  0xd6   :  { %v505_v48 = vsel %vm499_vm4, %v484_v45, %v3426_v46 }
  0xd7   :  { %1082 = vmatprep.subr.mxu0 %v505_v48 }
  0xd8   :  { %1083 = vmatpush1.msra.mxu0 %v504_v49  ;;  %v213_v50 = vpop.permute.xlu0 %212 }
  0xd9   :  { %v215_v51 = vpop.permute.xlu1 %214  ;;  %v235_v54 = vsel %vm232_vm7, %v3327_v52, %v213_v50 }
  0xda   :  { %v236_v53 = vsel %vm232_vm7, %v213_v50, %v215_v51 }
  0xdb   :  { %1017 = vmatprep.subr.mxu1 %v236_v53 }
  0xdc   :  { %1018 = vmatpush1.msra.mxu1 %v235_v54  ;;  %v395_v47 = vpop.permute.xlu0 %394 }
  0xdd   :  { %v3434_v55 = vpop.permute.xlu1 %396  ;;  %v415_v57 = vsel %vm410_vm5, %v393_v33, %v395_v47 }
  0xde   :  { %v416_v56 = vsel %vm410_vm5, %v395_v47, %v3434_v55 }
  0xdf   :  { %1084 = vmatprep.subr.mxu0 %v416_v56 }
  0xe0   :  { %1085 = vmatpush1.msra.mxu0 %v415_v57  ;;  %v124_v58 = vpop.permute.xlu0 %123 }
  0xe1   :  { %v126_v60 = vpop.permute.xlu1 %125  ;;  %v146_v62 = vsel %vm143_vm8, %v3340_v59, %v124_v58 }
  0xe2   :  { %v147_v61 = vsel %vm143_vm8, %v124_v58, %v126_v60 }
  0xe3   :  { %1019 = vmatprep.subr.mxu1 %v147_v61 }
  0xe4   :  { %1020 = vmatpush1.msra.mxu1 %v146_v62  ;;  %v306_v52 = vpop.permute.xlu0 %305 }
  0xe5   :  { %1021 = vmatprep.subr.mxu1 %v3175_v14  ;;  %v3443_v63 = vpop.permute.xlu1 %307  ;;  %v326_v1 = vsel %vm321_vm6, %v304_v42, %v306_v52 }
  0xe6   :  { %1022 = vmatpush1.msra.mxu1 %v3125_v11  ;;  %v327_v0 = vsel %vm321_vm6, %v306_v52, %v3443_v63 }
  0xe7   :  { %2929 = vmatmul.mubr.msk.f32.vlgmr.msra.gmra.mxu1 %vm916_vm9, %v3364_v7  ;;  %1086 = vmatprep.subr.mxu0 %v327_v0 }
  0xe8   :  { %1087 = vmatpush1.msra.mxu0 %v326_v1  ;;  %1197 = vmatprep.mubr.f32.mxu1 %v3056_v2  ;;  %v217_v59 = vpop.permute.xlu0 %216 }
  0xe9   :  { %v3452_v3 = vpop.permute.xlu1 %218  ;;  %v237_v11 = vsel %vm232_vm7, %v215_v51, %v217_v59 }
  0xea   :  { %v238_v14 = vsel %vm232_vm7, %v217_v59, %v3452_v3 }
  0xeb   :  { %1088 = vmatprep.subr.mxu0 %v238_v14 }
  0xec   :  { %1089 = vmatpush1.msra.mxu0 %v237_v11  ;;  %v128_v4 = vpop.permute.xlu0 %127 }
  0xed   :  { %v3457_v5 = vpop.permute.xlu1 %129  ;;  %v148_v8 = vsel %vm143_vm8, %v126_v60, %v128_v4 }
  0xee   :  { %v149_v6 = vsel %vm143_vm8, %v128_v4, %v3457_v5 }
  0xef   :  { %1090 = vmatprep.subr.mxu0 %v149_v6 }
  0xf0   :  { %1091 = vmatpush1.msra.mxu0 %v148_v8  ;;  %v755_v9 = vpop.permute.xlu0 %754 }
  0xf1   :  { %v757_v10 = vpop.permute.xlu1 %756  ;;  %1092 = vmatprep.subr.mxu0 %v3195_v16  ;;  %v773_v13 = vsel %vm766_vm1, %v3380_v20, %v755_v9 }
  0xf2   :  { %1093 = vmatpush1.msra.mxu0 %v3181_v15  ;;  %v774_v12 = vsel %vm766_vm1, %v755_v9, %v757_v10 }
  0xf3   :  { %2930 = vmatmul.mubr.msk.f32.vlgmr.msra.gmra.mxu0 %vm916_vm9, %v3364_v7  ;;  %1147 = vmatprep.subr.mxu1 %v774_v12 }
  0xf4   :  { %1148 = vmatpush1.msra.mxu1 %v773_v13  ;;  %1268 = vmatprep.mubr.f32.mxu0 %v3056_v2  ;;  %v666_v21 = vpop.permute.xlu0 %665 }
  0xf5   :  { %v668_v22 = vpop.permute.xlu1 %667  ;;  %v684_v16 = vsel %vm677_vm2, %v3396_v29, %v666_v21 }
  0xf6   :  { %v685_v23 = vsel %vm677_vm2, %v666_v21, %v668_v22 }
  0xf7   :  { %1149 = vmatprep.subr.mxu1 %v685_v23 }
  0xf8   :  { %1150 = vmatpush1.msra.mxu1 %v684_v16  ;;  %v577_v15 = vpop.permute.xlu0 %576 }
  0xf9   :  { %v579_v25 = vpop.permute.xlu1 %578  ;;  %v595_v26 = vsel %vm588_vm3, %v3417_v38, %v577_v15 }
  0xfa   :  { %v596_v20 = vsel %vm588_vm3, %v577_v15, %v579_v25 }
  0xfb   :  { %1151 = vmatprep.subr.mxu1 %v596_v20 }
  0xfc   :  { %1152 = vmatpush1.msra.mxu1 %v595_v26  ;;  %v759_v27 = vpop.permute.xlu0 %758 }
  0xfd   :  { %v3476_v28 = vpop.permute.xlu1 %2988  ;;  %v775_v29 = vsel %vm766_vm1, %v757_v10, %v759_v27 }
  0xfe   :  { %v2990_v30 = vunpack.i.l.bf16 %v3476_v28  ;;  %v2991_v23 = vunpack.i.h.bf16 %v3476_v28 }
 0x100   :  { %v488_v31 = vpop.permute.xlu0 %487  ;;  %v776_v32 = vsel %vm766_vm1, %v759_v27, %v2990_v30  ;;  %v777_v27 = vsel %vm766_vm1, %v2990_v30, %v2991_v23 }
 0x101   :  { %v490_v33 = vpop.permute.xlu1 %489  ;;  %v506_v34 = vsel %vm499_vm4, %v3426_v46, %v488_v31  ;;  %1218 = vmatprep.subr.mxu0 %v776_v32 }
 0x102   :  { %v507_v35 = vsel %vm499_vm4, %v488_v31, %v490_v33  ;;  %1219 = vmatpush1.msra.mxu0 %v775_v29 }
 0x103   :  { %1153 = vmatprep.subr.mxu1 %v507_v35 }
 0x104   :  { %1154 = vmatpush1.msra.mxu1 %v506_v34  ;;  %v670_v37 = vpop.permute.xlu0 %669 }
 0x105   :  { %v3488_v38 = vpop.permute.xlu1 %2993  ;;  %v686_v40 = vsel %vm677_vm2, %v668_v22, %v670_v37 }
 0x106   :  { %v2995_v39 = vunpack.i.l.bf16 %v3488_v38  ;;  %v2996_v15 = vunpack.i.h.bf16 %v3488_v38 }
 0x108   :  { %v399_v41 = vpop.permute.xlu0 %398  ;;  %v687_v42 = vsel %vm677_vm2, %v670_v37, %v2995_v39 }
 0x109   :  { %v401_v43 = vpop.permute.xlu1 %400  ;;  %1220 = vmatprep.subr.mxu0 %v687_v42  ;;  %v417_v44 = vsel %vm410_vm5, %v3434_v55, %v399_v41 }
 0x10a   :  { %v418_v45 = vsel %vm410_vm5, %v399_v41, %v401_v43  ;;  %1221 = vmatpush1.msra.mxu0 %v686_v40 }
 0x10b   :  { %1155 = vmatprep.subr.mxu1 %v418_v45 }
 0x10c   :  { %1156 = vmatpush1.msra.mxu1 %v417_v44  ;;  %v581_v46 = vpop.permute.xlu0 %580 }
 0x10d   :  { %v3498_v48 = vpop.permute.xlu1 %582  ;;  %v597_v49 = vsel %vm588_vm3, %v579_v25, %v581_v46 }
 0x10e   :  { %v598_v50 = vsel %vm588_vm3, %v581_v46, %v3498_v48 }
 0x10f   :  { %1222 = vmatprep.subr.mxu0 %v598_v50 }
 0x110   :  { %1223 = vmatpush1.msra.mxu0 %v597_v49  ;;  %v310_v51 = vpop.permute.xlu0 %309 }
 0x111   :  { %v312_v53 = vpop.permute.xlu1 %311  ;;  %v328_v54 = vsel %vm321_vm6, %v3443_v63, %v310_v51 }
 0x112   :  { %v329_v47 = vsel %vm321_vm6, %v310_v51, %v312_v53 }
 0x113   :  { %1157 = vmatprep.subr.mxu1 %v329_v47 }
 0x114   :  { %1158 = vmatpush1.msra.mxu1 %v328_v54  ;;  %v492_v55 = vpop.permute.xlu0 %491 }
 0x115   :  { %v3506_v56 = vpop.permute.xlu1 %493  ;;  %v508_v57 = vsel %vm499_vm4, %v490_v33, %v492_v55 }
 0x116   :  { %v509_v58 = vsel %vm499_vm4, %v492_v55, %v3506_v56 }
 0x117   :  { %1224 = vmatprep.subr.mxu0 %v509_v58 }
 0x118   :  { %1225 = vmatpush1.msra.mxu0 %v508_v57  ;;  %v221_v60 = vpop.permute.xlu0 %220 }
 0x119   :  { %v223_v61 = vpop.permute.xlu1 %222  ;;  %v239_v62 = vsel %vm232_vm7, %v3452_v3, %v221_v60 }
 0x11a   :  { %v240_v52 = vsel %vm232_vm7, %v221_v60, %v223_v61 }
 0x11b   :  { %1159 = vmatprep.subr.mxu1 %v240_v52 }
 0x11c   :  { %1160 = vmatpush1.msra.mxu1 %v239_v62  ;;  %v403_v63 = vpop.permute.xlu0 %402 }
 0x11d   :  { %v3514_v0 = vpop.permute.xlu1 %404  ;;  %v419_v1 = vsel %vm410_vm5, %v401_v43, %v403_v63 }
 0x11e   :  { %v420_v59 = vsel %vm410_vm5, %v403_v63, %v3514_v0 }
 0x11f   :  { %1226 = vmatprep.subr.mxu0 %v420_v59 }
 0x120   :  { %1227 = vmatpush1.msra.mxu0 %v419_v1  ;;  %v132_v14 = vpop.permute.xlu0 %131 }
 0x121   :  { %v134_v11 = vpop.permute.xlu1 %133  ;;  %v150_v4 = vsel %vm143_vm8, %v3457_v5, %v132_v14 }
 0x122   :  { %v151_v3 = vsel %vm143_vm8, %v132_v14, %v134_v11 }
 0x123   :  { %1161 = vmatprep.subr.mxu1 %v151_v3 }
 0x124   :  { %1162 = vmatpush1.msra.mxu1 %v150_v4  ;;  %v314_v6 = vpop.permute.xlu0 %313 }
 0x125   :  { %v3522_v8 = vpop.permute.xlu1 %315  ;;  %1163 = vmatprep.subr.mxu1 %v3251_v18  ;;  %v330_v9 = vsel %vm321_vm6, %v312_v53, %v314_v6 }
 0x126   :  { %1164 = vmatpush1.msra.mxu1 %v3197_v17  ;;  %v331_v10 = vsel %vm321_vm6, %v314_v6, %v3522_v8 }
 0x127   :  { %2931 = vmatmul.mubr.msk.f32.vlgmr.msra.gmra.mxu1 %vm916_vm9, %v3364_v7  ;;  %1228 = vmatprep.subr.mxu0 %v331_v10 }
 0x128   :  { %1229 = vmatpush1.msra.mxu0 %v330_v9  ;;  %v225_v5 = vpop.permute.xlu0 %224  ;;  %1339 = vmatprep.mubr.f32.mxu1 %v3056_v2 }
 0x129   :  { %v3532_v12 = vpop.permute.xlu1 %226  ;;  %v241_v13 = vsel %vm232_vm7, %v223_v61, %v225_v5  ;;  %v1362_v61 = vlaneseq }
 0x12a   :  { %v242_v18 = vsel %vm232_vm7, %v225_v5, %v3532_v12 }
 0x12b   :  { %1230 = vmatprep.subr.mxu0 %v242_v18  ;;  %v3576_v62 = vshrl.u32 %v1362_v61, 7  ;;  %v3067_v61 = vmov 17  }
 0x12c   :  { %v136_v17 = vpop.permute.xlu0 %135  ;;  %1231 = vmatpush1.msra.mxu0 %v241_v13  ;;  %3028 = vset.pattern.permute.xlu0 %v3067_v61 }
 0x12d   :  { %v138_v21 = vpop.permute.xlu1 %137  ;;  %v152_v22 = vsel %vm143_vm8, %v134_v11, %v136_v17  ;;  %v1364_v52 = vsub.s32 0, %v3576_v62  ;;  %v1372_v11 = vsub.s32 2, %v3576_v62 }
 0x12e   :  { %v153_v16 = vsel %vm143_vm8, %v136_v17, %v138_v21 }
 0x12f   :  { %1232 = vmatprep.subr.mxu0 %v153_v16 }
 0x130   :  { %1233 = vmatpush1.msra.mxu0 %v152_v22  ;;  %v765_v25 = vpop.permute.xlu0 %764  ;;  %v1376_v22 = vsub.s32 3, %v3576_v62 }
 0x131   :  { %v676_v20 = vpop.permute.xlu1 %675  ;;  %1234 = vmatprep.subr.mxu0 %v3271_v24  ;;  %v778_v26 = vsel %vm766_vm1, %v2991_v23, %v765_v25  ;;  %v688_v24 = vsel %vm677_vm2, %v2995_v39, %v2996_v15 }
 0x132   :  { %1235 = vmatpush1.msra.mxu0 %v3253_v19  ;;  %1289 = vmatprep.subr.mxu1 %v778_v26  ;;  %v689_v29 = vsel %vm677_vm2, %v2996_v15, %v676_v20 }
 0x133   :  { %2932 = vmatmul.mubr.msk.f32.vlgmr.msra.gmra.mxu0 %vm916_vm9, %v3364_v7  ;;  %1290 = vmatpush1.msra.mxu1 %v777_v27  ;;  %v1380_v27 = vsub.s32 4, %v3576_v62 }
 0x134   :  { %v2999_v31 = vpop.permute.xlu0 %2998  ;;  %1291 = vmatprep.subr.mxu1 %v689_v29  ;;  %2292 = vmatprep.mubr.f32.mxu0 %v3056_v2 }
 0x135   :  { %v3001_v19 = vunpack.i.h.bf16 %v2999_v31  ;;  %v3000_v32 = vunpack.i.l.bf16 %v2999_v31  ;;  %v3004_v33 = vpop.permute.xlu1 %3003  ;;  %1292 = vmatpush1.msra.mxu1 %v688_v24 }
 0x136   :  { %v3006_v28 = vunpack.i.h.bf16 %v3004_v33  ;;  %v3005_v30 = vunpack.i.l.bf16 %v3004_v33  ;;  %v1384_v33 = vsub.s32 5, %v3576_v62 }
 0x137   :  { %v600_v34 = vsel %vm588_vm3, %v3000_v32, %v3001_v19  ;;  %v599_v35 = vsel %vm588_vm3, %v3498_v48, %v3000_v32 }
 0x138   :  { %v3009_v37 = vpop.permute.xlu0 %3008  ;;  %1293 = vmatprep.subr.mxu1 %v600_v34  ;;  %v511_v40 = vsel %vm499_vm4, %v3005_v30, %v3006_v28  ;;  %v510_v44 = vsel %vm499_vm4, %v3506_v56, %v3005_v30 }
 0x139   :  { %v3011_v38 = vunpack.i.h.bf16 %v3009_v37  ;;  %v3010_v41 = vunpack.i.l.bf16 %v3009_v37  ;;  %1294 = vmatpush1.msra.mxu1 %v599_v35  ;;  %v3014_v39 = vpop.permute.xlu1 %3013 }
 0x13a   :  { %v3016_v42 = vunpack.i.h.bf16 %v3014_v39  ;;  %v3015_v43 = vunpack.i.l.bf16 %v3014_v39  ;;  %1295 = vmatprep.subr.mxu1 %v511_v40  ;;  %v1392_v39 = vsub.s32 7, %v3576_v62 }
 0x13b   :  { %1296 = vmatpush1.msra.mxu1 %v510_v44  ;;  %v422_v45 = vsel %vm410_vm5, %v3010_v41, %v3011_v38  ;;  %v421_v46 = vsel %vm410_vm5, %v3514_v0, %v3010_v41  ;;  %v3584_v0 = vld [vmem:[%s4256_s2] sm:$0xff]  ;;  %v1388_v38 = vsub.s32 6, %v3576_v62 }
 0x13c   :  { %v3019_v48 = vpop.permute.xlu0 %3018  ;;  %1297 = vmatprep.subr.mxu1 %v422_v45  ;;  %v333_v49 = vsel %vm321_vm6, %v3015_v43, %v3016_v42  ;;  %v332_v50 = vsel %vm321_vm6, %v3522_v8, %v3015_v43  ;;  %v1373_v6 = vrot.slane %v3584_v0, %v1372_v11  ;;  %v1377_v15 = vrot.slane %v3584_v0, %v1376_v22 }
 0x13d   :  { %v3021_v51 = vunpack.i.h.bf16 %v3019_v48  ;;  %v3020_v53 = vunpack.i.l.bf16 %v3019_v48  ;;  %1298 = vmatpush1.msra.mxu1 %v421_v46  ;;  %v3024_v54 = vpop.permute.xlu1 %3023  ;;  %v1381_v31 = vrot.slane %v3584_v0, %v1380_v27  ;;  %v1385_v30 = vrot.slane %v3584_v0, %v1384_v33 }
 0x13e   :  { %v3026_v47 = vunpack.i.h.bf16 %v3024_v54  ;;  %v3025_v55 = vunpack.i.l.bf16 %v3024_v54  ;;  %1299 = vmatprep.subr.mxu1 %v333_v49  ;;  %v1389_v43 = vrot.slane %v3584_v0, %v1388_v38  ;;  %v1393_v45 = vrot.slane %v3584_v0, %v1392_v39 }
 0x13f   :  { %1300 = vmatpush1.msra.mxu1 %v332_v50  ;;  %v244_v56 = vsel %vm232_vm7, %v3020_v53, %v3021_v51  ;;  %v243_v57 = vsel %vm232_vm7, %v3532_v12, %v3020_v53  ;;  %v1368_v12 = vsub.s32 1, %v3576_v62  ;;  %v3749_v53 = vld [vmem:[%s4256_s2 + $0x8] sm:$0xf] }
 0x140   :  { %1301 = vmatprep.subr.mxu1 %v244_v56  ;;  %v155_v58 = vsel %vm143_vm8, %v3025_v55, %v3026_v47  ;;  %v154_v60 = vsel %vm143_vm8, %v138_v21, %v3025_v55  ;;  %v1397_v56 = vrot.slane %v3749_v53, %v1364_v52 }
 0x141   :  { %1302 = vmatpush1.msra.mxu1 %v243_v57  ;;  %v1369_v17 = vrot.slane %v3584_v0, %v1368_v12  ;;  %v3755_v54 = vpop.permute.xlu1 %2222 }
 0x142   :  { %1303 = vmatprep.subr.mxu1 %v155_v58 }
 0x143   :  { %1304 = vmatpush1.msra.mxu1 %v154_v60 }
 0x144   :  { %1305 = vmatprep.subr.mxu1 %v3056_v2 }
 0x145   :  { %1306 = vmatpush1.msra.mxu1 %v3056_v2 }
 0x146   :  { %2933 = vmatmul.mubr.msk.f32.vlgmr.msra.gmra.mxu1 %vm916_vm9, %v3364_v7  ;;  %v1365_v7 = vrot.slane %v3584_v0, %v1364_v52 }
 0x147   :  { %2363 = vmatprep.mubr.f32.mxu1 %v3056_v2 }
 0x149   :  { %v3579_v63 = vpop.permute.xlu0 %913 }
 0x14d   :  { %v3739_v49 = vpop.permute.xlu0 %2220 }
 0x176   :  { %v986_v1 = vpop.f32.mrf.mxu0 }
 0x177   :  { %v987_v59 = vadd.f32 %v986_v1, %v3579_v63 }
 0x178   :  { %v988_v10 = vpop.f32.mrf.mxu0 }
 0x179   :  { %v1346_v2 = vmax.f32 %v987_v59, 0.0  ;;  %v989_v5 = vadd.f32 %v988_v10, %v3579_v63 }
 0x17b   :  { %v3590_v14 = vmul.f32 %v1365_v7, %v1346_v2  ;;  %v1347_v18 = vmax.f32 %v989_v5, 0.0 }
 0x17d   :  { %2059 = vrot.lane.b32.xlu0 %v3590_v14, %s3057_s24  ;;  %v3636_v23 = vmul.f32 %v1369_v17, %v1347_v18 }
 0x1a7   :  { %v1057_v4 = vpop.f32.mrf.mxu1 }
 0x1a8   :  { %v1058_v3 = vadd.f32 %v1057_v4, %v3579_v63 }
 0x1a9   :  { %v1059_v13 = vpop.f32.mrf.mxu1 }
 0x1aa   :  { %v1348_v8 = vmax.f32 %v1058_v3, 0.0  ;;  %v1060_v21 = vadd.f32 %v1059_v13, %v3579_v63 }
 0x1ac   :  { %v3599_v9 = vmul.f32 %v1373_v6, %v1348_v8  ;;  %v1349_v16 = vmax.f32 %v1060_v21, 0.0  ;;  %v1405_v8 = vrot.slane %v3749_v53, %v1372_v11 }
 0x1ae   :  { %2063 = vrot.lane.b32.xlu1 %v3599_v9, %s3057_s24  ;;  %1982 = vrot.lane.b32.xlu0 %v3599_v9, %s3058_s25  ;;  %v3645_v25 = vmul.f32 %v1377_v15, %v1349_v16  ;;  %v1401_v15 = vrot.slane %v3749_v53, %v1368_v12 }
 0x1b2   :  { %1978 = vrot.lane.b32.xlu1 %v3590_v14, %s3058_s25  ;;  %1897 = vrot.lane.b32.xlu0 %v3590_v14, %s3059_s0 }
 0x1b3   :  { %v1128_v20 = vpop.f32.mrf.mxu0 }
 0x1b4   :  { %v1129_v26 = vadd.f32 %v1128_v20, %v3579_v63 }
 0x1b5   :  { %v1130_v19 = vpop.f32.mrf.mxu0 }
 0x1b6   :  { %1901 = vrot.lane.b32.xlu1 %v3599_v9, %s3059_s0  ;;  %1820 = vrot.lane.b32.xlu0 %v3599_v9, %s3060_s26  ;;  %v1350_v29 = vmax.f32 %v1129_v26, 0.0  ;;  %v1131_v32 = vadd.f32 %v1130_v19, %v3579_v63 }
 0x1b8   :  { %v3678_v24 = vmul.f32 %v1381_v31, %v1350_v29  ;;  %v1351_v28 = vmax.f32 %v1131_v32, 0.0 }
 0x1ba   :  { %1816 = vrot.lane.b32.xlu1 %v3590_v14, %s3060_s26  ;;  %1735 = vrot.lane.b32.xlu0 %v3590_v14, %s3061_s27  ;;  %v3695_v35 = vmul.f32 %v1385_v30, %v1351_v28 }
 0x1be   :  { %1739 = vrot.lane.b32.xlu1 %v3599_v9, %s3061_s27  ;;  %1658 = vrot.lane.b32.xlu0 %v3599_v9, %s3062_s28 }
 0x1c2   :  { %1654 = vrot.lane.b32.xlu1 %v3590_v14, %s3062_s28  ;;  %1573 = vrot.lane.b32.xlu0 %v3590_v14, %s3063_s29 }
 0x1c6   :  { %1577 = vrot.lane.b32.xlu1 %v3599_v9, %s3063_s29  ;;  %1496 = vrot.lane.b32.xlu0 %v3599_v9, %s3064_s30 }
 0x1ca   :  { %1492 = vrot.lane.b32.xlu1 %v3590_v14, %s3064_s30  ;;  %1899 = vrot.lane.b32.xlu0 %v3636_v23, %s3059_s0 }
 0x1ce   :  { %2061 = vrot.lane.b32.xlu1 %v3636_v23, %s3057_s24  ;;  %2065 = vrot.lane.b32.xlu0 %v3645_v25, %s3057_s24 }
 0x1d2   :  { %1980 = vrot.lane.b32.xlu1 %v3636_v23, %s3058_s25  ;;  %1737 = vrot.lane.b32.xlu0 %v3636_v23, %s3061_s27 }
 0x1d6   :  { %1818 = vrot.lane.b32.xlu1 %v3636_v23, %s3060_s26  ;;  %1903 = vrot.lane.b32.xlu0 %v3645_v25, %s3059_s0 }
 0x1da   :  { %1984 = vrot.lane.b32.xlu1 %v3645_v25, %s3058_s25  ;;  %1575 = vrot.lane.b32.xlu0 %v3636_v23, %s3063_s29 }
 0x1de   :  { %1656 = vrot.lane.b32.xlu1 %v3636_v23, %s3062_s28  ;;  %1741 = vrot.lane.b32.xlu0 %v3645_v25, %s3061_s27 }
 0x1e2   :  { %1822 = vrot.lane.b32.xlu1 %v3645_v25, %s3060_s26  ;;  %1579 = vrot.lane.b32.xlu0 %v3645_v25, %s3063_s29 }
 0x1e6   :  { %1494 = vrot.lane.b32.xlu1 %v3636_v23, %s3064_s30  ;;  %1498 = vrot.lane.b32.xlu0 %v3645_v25, %s3064_s30 }
 0x1e7   :  { %v1199_v34 = vpop.f32.mrf.mxu1 }
 0x1e8   :  { %v1200_v40 = vadd.f32 %v1199_v34, %v3579_v63 }
 0x1e9   :  { %v1201_v37 = vpop.f32.mrf.mxu1 }
 0x1ea   :  { %1660 = vrot.lane.b32.xlu1 %v3645_v25, %s3062_s28  ;;  %1986 = vrot.lane.b32.xlu0 %v3678_v24, %s3058_s25  ;;  %v1202_v41 = vadd.f32 %v1201_v37, %v3579_v63  ;;  %v1352_v42 = vmax.f32 %v1200_v40, 0.0 }
 0x1ec   :  { %v1353_v44 = vmax.f32 %v1202_v41, 0.0  ;;  %v3715_v46 = vmul.f32 %v1389_v43, %v1352_v42 }
 0x1ee   :  { %2067 = vrot.lane.b32.xlu1 %v3678_v24, %s3057_s24  ;;  %1824 = vrot.lane.b32.xlu0 %v3678_v24, %s3060_s26  ;;  %v3717_v48 = vmul.f32 %v1393_v45, %v1353_v44 }
 0x1ef   :  { %v2060_v47 = vpop.permute.xlu0 %2059 }
 0x1f2   :  { %1905 = vrot.lane.b32.xlu1 %v3678_v24, %s3059_s0  ;;  %1662 = vrot.lane.b32.xlu0 %v3678_v24, %s3062_s28 }
 0x1f3   :  { %v1270_v50 = vpop.f32.mrf.mxu0 }
 0x1f4   :  { %v1271_v51 = vadd.f32 %v1270_v50, %v3579_v63 }
 0x1f5   :  { %v1272_v13 = vpop.f32.mrf.mxu0 }
 0x1f6   :  { %1743 = vrot.lane.b32.xlu1 %v3678_v24, %s3061_s27  ;;  %2069 = vrot.lane.b32.xlu0 %v3695_v35, %s3057_s24  ;;  %v1354_v55 = vmax.f32 %v1271_v51, 0.0  ;;  %v1273_v18 = vadd.f32 %v1272_v13, %v3579_v63 }
 0x1f8   :  { %v3764_v57 = vmul.f32 %v1397_v56, %v1354_v55  ;;  %v1355_v11 = vmax.f32 %v1273_v18, 0.0 }
 0x1fa   :  { %1581 = vrot.lane.b32.xlu1 %v3678_v24, %s3063_s29  ;;  %1988 = vrot.lane.b32.xlu0 %v3695_v35, %s3058_s25  ;;  %v3824_v27 = vmul.f32 %v1401_v15, %v1355_v11  ;;  %v3917_v11 = vld [vmem:[#allocation2 + $0x50] sm:$0xff] }
 0x1fe   :  { %1500 = vrot.lane.b32.xlu1 %v3678_v24, %s3064_s30  ;;  %1907 = vrot.lane.b32.xlu0 %v3695_v35, %s3059_s0 }
 0x202   :  { %2071 = vrot.lane.b32.xlu1 %v3715_v46, %s3057_s24  ;;  %2073 = vrot.lane.b32.xlu0 %v3717_v48, %s3057_s24 }
 0x206   :  { %1990 = vrot.lane.b32.xlu1 %v3715_v46, %s3058_s25  ;;  %1826 = vrot.lane.b32.xlu0 %v3695_v35, %s3060_s26  ;;  %v1341_v7 = vpop.f32.mrf.mxu1 }
 0x207   :  { %v1342_v2 = vadd.f32 %v1341_v7, %v3579_v63 }
 0x208   :  { %v1343_v19 = vpop.f32.mrf.mxu1 }
 0x209   :  { %v1356_v6 = vmax.f32 %v1342_v2, 0.0  ;;  %v1344_v33 = vadd.f32 %v1343_v19, %v3579_v63  ;;  %v1409_v63 = vrot.slane %v3749_v53, %v1376_v22 }
 0x20a   :  { %1909 = vrot.lane.b32.xlu1 %v3715_v46, %s3059_s0  ;;  %1992 = vrot.lane.b32.xlu0 %v3717_v48, %s3058_s25 }
 0x20b   :  { %v3805_v17 = vmul.f32 %v1405_v8, %v1356_v6  ;;  %v1357_v40 = vmax.f32 %v1344_v33, 0.0 }
 0x20d   :  { %v3857_v43 = vmul.f32 %v1409_v63, %v1357_v40 }
 0x20e   :  { %1828 = vrot.lane.b32.xlu1 %v3715_v46, %s3060_s26  ;;  %1745 = vrot.lane.b32.xlu0 %v3695_v35, %s3061_s27 }
 0x212   :  { %1747 = vrot.lane.b32.xlu1 %v3715_v46, %s3061_s27  ;;  %1911 = vrot.lane.b32.xlu0 %v3717_v48, %s3059_s0 }
 0x216   :  { %1666 = vrot.lane.b32.xlu1 %v3715_v46, %s3062_s28  ;;  %1664 = vrot.lane.b32.xlu0 %v3695_v35, %s3062_s28 }
 0x21a   :  { %1585 = vrot.lane.b32.xlu1 %v3715_v46, %s3063_s29  ;;  %1830 = vrot.lane.b32.xlu0 %v3717_v48, %s3060_s26 }
 0x21e   :  { %1504 = vrot.lane.b32.xlu1 %v3715_v46, %s3064_s30  ;;  %1583 = vrot.lane.b32.xlu0 %v3695_v35, %s3063_s29 }
 0x220   :  { %v3766_v58 = vpop.permute.xlu1 %2063  ;;  %v3768_v60 = vpop.permute.xlu0 %1982 }
 0x222   :  { %2075 = vrot.lane.b32.xlu1 %v3764_v57, %s3057_s24  ;;  %1749 = vrot.lane.b32.xlu0 %v3717_v48, %s3061_s27 }
 0x224   :  { %v1979_v52 = vpop.permute.xlu1 %1978  ;;  %v1898_v0 = vpop.permute.xlu0 %1897 }
 0x226   :  { %1994 = vrot.lane.b32.xlu1 %v3764_v57, %s3058_s25  ;;  %1502 = vrot.lane.b32.xlu0 %v3695_v35, %s3064_s30 }
 0x228   :  { %v3778_v1 = vpop.permute.xlu1 %1901  ;;  %v3780_v59 = vpop.permute.xlu0 %1820 }
 0x22a   :  { %1913 = vrot.lane.b32.xlu1 %v3764_v57, %s3059_s0  ;;  %1668 = vrot.lane.b32.xlu0 %v3717_v48, %s3062_s28 }
 0x22c   :  { %v1817_v4 = vpop.permute.xlu1 %1816  ;;  %v3787_v3 = vpop.permute.xlu0 %1735 }
 0x22e   :  { %1832 = vrot.lane.b32.xlu1 %v3764_v57, %s3060_s26  ;;  %1587 = vrot.lane.b32.xlu0 %v3717_v48, %s3063_s29 }
 0x230   :  { %v3796_v10 = vpop.permute.xlu1 %1739  ;;  %v3798_v5 = vpop.permute.xlu0 %1658 }
 0x232   :  { %1751 = vrot.lane.b32.xlu1 %v3764_v57, %s3061_s27  ;;  %1506 = vrot.lane.b32.xlu0 %v3717_v48, %s3064_s30 }
 0x234   :  { %v1655_v21 = vpop.permute.xlu1 %1654  ;;  %v3807_v16 = vpop.permute.xlu0 %1573 }
 0x236   :  { %1670 = vrot.lane.b32.xlu1 %v3764_v57, %s3062_s28  ;;  %1836 = vrot.lane.b32.xlu0 %v3805_v17, %s3060_s26 }
 0x238   :  { %v3816_v20 = vpop.permute.xlu1 %1577  ;;  %v3818_v26 = vpop.permute.xlu0 %1496 }
 0x23a   :  { %1589 = vrot.lane.b32.xlu1 %v3764_v57, %s3063_s29  ;;  %1674 = vrot.lane.b32.xlu0 %v3805_v17, %s3062_s28 }
 0x23c   :  { %v3826_v29 = vpop.permute.xlu1 %1492  ;;  %v1900_v31 = vpop.permute.xlu0 %1899 }
 0x23d   :  { %v1922_v39 = vsel %vm588_vm3, %v1900_v31, %v3778_v1  ;;  %v1921_v22 = vsel %vm588_vm3, %v1898_v0, %v1900_v31 }
 0x23e   :  { %1508 = vrot.lane.b32.xlu1 %v3764_v57, %s3064_s30  ;;  %2077 = vrot.lane.b32.xlu0 %v3824_v27, %s3057_s24 }
 0x240   :  { %v2062_v12 = vpop.permute.xlu1 %2061  ;;  %v3832_v32 = vpop.permute.xlu0 %2065 }
 0x241   :  { %v2084_v28 = vsel %vm766_vm1, %v2062_v12, %v3766_v58  ;;  %v2083_v30 = vsel %vm766_vm1, %v2060_v47, %v2062_v12 }
 0x242   :  { %2079 = vrot.lane.b32.xlu1 %v3805_v17, %s3057_s24  ;;  %2242 = vmatprep.subr.mxu0 %v2084_v28 }
 0x243   :  { %1996 = vrot.lane.b32.xlu0 %v3824_v27, %s3058_s25  ;;  %2243 = vmatpush1.msra.mxu0 %v2083_v30 }
 0x244   :  { %v1981_v34 = vpop.permute.xlu1 %1980  ;;  %v1738_v37 = vpop.permute.xlu0 %1737 }
 0x245   :  { %v2003_v38 = vsel %vm677_vm2, %v1981_v34, %v3768_v60  ;;  %v2002_v41 = vsel %vm677_vm2, %v1979_v52, %v1981_v34  ;;  %v1760_v50 = vsel %vm410_vm5, %v1738_v37, %v3796_v10  ;;  %v1759_v47 = vsel %vm410_vm5, %v3787_v3, %v1738_v37 }
 0x246   :  { %1998 = vrot.lane.b32.xlu1 %v3805_v17, %s3058_s25  ;;  %2244 = vmatprep.subr.mxu0 %v2003_v38 }
 0x247   :  { %1915 = vrot.lane.b32.xlu0 %v3824_v27, %s3059_s0  ;;  %2245 = vmatpush1.msra.mxu0 %v2002_v41 }
 0x248   :  { %v1819_v42 = vpop.permute.xlu1 %1818  ;;  %2246 = vmatprep.subr.mxu0 %v1922_v39  ;;  %v3854_v62 = vpop.permute.xlu0 %1903 }
 0x249   :  { %2247 = vmatpush1.msra.mxu0 %v1921_v22  ;;  %v1841_v44 = vsel %vm499_vm4, %v1819_v42, %v3780_v59  ;;  %v1840_v45 = vsel %vm499_vm4, %v1817_v4, %v1819_v42 }
 0x24a   :  { %1917 = vrot.lane.b32.xlu1 %v3805_v17, %s3059_s0  ;;  %2248 = vmatprep.subr.mxu0 %v1841_v44 }
 0x24b   :  { %2081 = vrot.lane.b32.xlu0 %v3857_v43, %s3057_s24  ;;  %2249 = vmatpush1.msra.mxu0 %v1840_v45  ;;  %s3069_s24 = smov 110  }
 0x24c   :  { %v1985_v51 = vpop.permute.xlu1 %1984  ;;  %2250 = vmatprep.subr.mxu0 %v1760_v50  ;;  %v1576_v53 = vpop.permute.xlu0 %1575 }
 0x24d   :  { %2251 = vmatpush1.msra.mxu0 %v1759_v47  ;;  %v1598_v0 = vsel %vm232_vm7, %v1576_v53, %v3816_v20  ;;  %v1597_v4 = vsel %vm232_vm7, %v3807_v16, %v1576_v53  ;;  %v3908_v16 = vsel %vm2224_vm10, %v3739_v49, %v3755_v54  ;;  %v2004_v19 = vsel %vm677_vm2, %v3768_v60, %v1985_v51 }
 0x24e   :  { %1755 = vrot.lane.b32.xlu1 %v3805_v17, %s3061_s27 }
 0x24f   :  { %1753 = vrot.lane.b32.xlu0 %v3824_v27, %s3061_s27 }
 0x250   :  { %v1657_v55 = vpop.permute.xlu1 %1656  ;;  %v3874_v56 = vpop.permute.xlu0 %1741 }
 0x251   :  { %v1679_v61 = vsel %vm321_vm6, %v1657_v55, %v3798_v5  ;;  %v1678_v52 = vsel %vm321_vm6, %v1655_v21, %v1657_v55 }
 0x252   :  { %1593 = vrot.lane.b32.xlu1 %v3805_v17, %s3063_s29  ;;  %2252 = vmatprep.subr.mxu0 %v1679_v61 }
 0x253   :  { %1919 = vrot.lane.b32.xlu0 %v3857_v43, %s3059_s0  ;;  %2253 = vmatpush1.msra.mxu0 %v1678_v52  ;;  %s3071_s0 = smov [#allocation7]  }
 0x254   :  { %v1823_v7 = vpop.permute.xlu1 %1822  ;;  %2254 = vmatprep.subr.mxu0 %v1598_v0  ;;  %v3885_v2 = vpop.permute.xlu0 %1579 }
 0x255   :  { %2255 = vmatpush1.msra.mxu0 %v1597_v4  ;;  %v1842_v28 = vsel %vm499_vm4, %v3780_v59, %v1823_v7 }
 0x256   :  { %1834 = vrot.lane.b32.xlu1 %v3824_v27, %s3060_s26 }
 0x257   :  { %1591 = vrot.lane.b32.xlu0 %v3824_v27, %s3063_s29 }
 0x258   :  { %v1495_v3 = vpop.permute.xlu1 %1494  ;;  %v3893_v6 = vpop.permute.xlu0 %1498 }
 0x259   :  { %v1517_v8 = vsel %vm143_vm8, %v1495_v3, %v3818_v26  ;;  %v1516_v13 = vsel %vm143_vm8, %v3826_v29, %v1495_v3  ;;  %v1518_v41 = vsel %vm143_vm8, %v3818_v26, %v3893_v6 }
 0x25a   :  { %2000 = vrot.lane.b32.xlu1 %v3857_v43, %s3058_s25  ;;  %2256 = vmatprep.subr.mxu0 %v1517_v8  ;;  %s3070_s25 = smov 111  }
 0x25b   :  { %1757 = vrot.lane.b32.xlu0 %v3857_v43, %s3061_s27  ;;  %2257 = vmatpush1.msra.mxu0 %v1516_v13 }
 0x25c   :  { %v1661_v18 = vpop.permute.xlu1 %1660  ;;  %2258 = vmatprep.subr.mxu0 %v3636_v23  ;;  %v3904_v21 = vpop.permute.xlu0 %1986 }
 0x25d   :  { %2259 = vmatpush1.msra.mxu0 %v3590_v14  ;;  %v2085_v14 = vsel %vm766_vm1, %v3766_v58, %v3832_v32  ;;  %v2005_v54 = vsel %vm677_vm2, %v1985_v51, %v3904_v21  ;;  %v1923_v58 = vsel %vm588_vm3, %v3778_v1, %v3854_v62  ;;  %v1761_v1 = vsel %vm410_vm5, %v3796_v10, %v3874_v56 }
 0x25e   :  { %1672 = vrot.lane.b32.xlu1 %v3824_v27, %s3062_s28  ;;  %2934 = vmatmul.mubr.msk.f32.vlgmr.msra.gmra.mxu0 %vm916_vm9, %v3908_v16  ;;  %v1680_v59 = vsel %vm321_vm6, %v3798_v5, %v1661_v18  ;;  %v1599_v10 = vsel %vm232_vm7, %v3816_v20, %v3885_v2 }
 0x25f   :  { %1512 = vrot.lane.b32.xlu0 %v3805_v17, %s3064_s30  ;;  %2434 = vmatprep.mubr.f32.mxu0 %v3917_v11 }
 0x260   :  { %v2068_v23 = vpop.permute.xlu1 %2067  ;;  %v3920_v15 = vpop.permute.xlu0 %1824 }
 0x261   :  { %v2086_v49 = vsel %vm766_vm1, %v3832_v32, %v2068_v23  ;;  %v1843_v32 = vsel %vm499_vm4, %v1823_v7, %v3920_v15 }
 0x262   :  { %1838 = vrot.lane.b32.xlu1 %v3857_v43, %s3060_s26  ;;  %2313 = vmatprep.subr.mxu1 %v2086_v49  ;;  %s2917_s26 = sshll.u32 %s3071_s0, 4  ;;  %s2918_s26 = int_to_ptr.vmem [resolvable:$true] %s2917_s26 }
 0x263   :  { %1595 = vrot.lane.b32.xlu0 %v3857_v43, %s3063_s29  ;;  %2314 = vmatpush1.msra.mxu1 %v2085_v14  ;;  %p3039_p1 = scmp.lt.s32.totalorder %s2918_s26, %s2918_s26 }
 0x264   :  { %v1906_v29 = vpop.permute.xlu1 %1905  ;;  %2315 = vmatprep.subr.mxu1 %v2005_v54  ;;  %v3933_v31 = vpop.permute.xlu0 %1662 }
 0x265   :  { %2316 = vmatpush1.msra.mxu1 %v2004_v19  ;;  %v1924_v12 = vsel %vm588_vm3, %v3854_v62, %v1906_v29 }
 0x266   :  { %1510 = vrot.lane.b32.xlu1 %v3824_v27, %s3064_s30  ;;  %2317 = vmatprep.subr.mxu1 %v1924_v12 }
 0x267   :  { %2318 = vmatpush1.msra.mxu1 %v1923_v58  ;;  %2216 = vperm.xlu0 %3028, %v3415_v36   ;;  %v1681_v36 = vsel %vm321_vm6, %v1661_v18, %v3933_v31 }
 0x268   :  { %v1744_v33 = vpop.permute.xlu1 %1743  ;;  %2319 = vmatprep.subr.mxu1 %v1843_v32  ;;  %v2070_v60 = vpop.permute.xlu0 %2069 }
 0x269   :  { %2320 = vmatpush1.msra.mxu1 %v1842_v28  ;;  %v1762_v30 = vsel %vm410_vm5, %v3874_v56, %v1744_v33  ;;  %v2087_v62 = vsel %vm766_vm1, %v2068_v23, %v2070_v60 }
 0x26a   :  { %1676 = vrot.lane.b32.xlu1 %v3857_v43, %s3062_s28  ;;  %2321 = vmatprep.subr.mxu1 %v1762_v30 }
 0x26b   :  { %2322 = vmatpush1.msra.mxu1 %v1761_v1 }
 0x26c   :  { %v1582_v34 = vpop.permute.xlu1 %1581  ;;  %2323 = vmatprep.subr.mxu1 %v1681_v36  ;;  %v1989_v37 = vpop.permute.xlu0 %1988 }
 0x26d   :  { %2324 = vmatpush1.msra.mxu1 %v1680_v59  ;;  %v1600_v40 = vsel %vm232_vm7, %v3885_v2, %v1582_v34 }
 0x26e   :  { %1514 = vrot.lane.b32.xlu1 %v3857_v43, %s3064_s30  ;;  %2325 = vmatprep.subr.mxu1 %v1600_v40 }
 0x26f   :  { %2326 = vmatpush1.msra.mxu1 %v1599_v10 }
 0x270   :  { %v3967_v63 = vpop.permute.xlu1 %1500  ;;  %v1908_v38 = vpop.permute.xlu0 %1907 }
 0x271   :  { %v1519_v5 = vsel %vm143_vm8, %v3893_v6, %v3967_v63  ;;  %v1925_v50 = vsel %vm588_vm3, %v1906_v29, %v1908_v38 }
 0x272   :  { %2327 = vmatprep.subr.mxu1 %v1519_v5 }
 0x273   :  { %2328 = vmatpush1.msra.mxu1 %v1518_v41 }
 0x274   :  { %v2072_v39 = vpop.permute.xlu1 %2071  ;;  %2329 = vmatprep.subr.mxu1 %v3645_v25  ;;  %v2074_v42 = vpop.permute.xlu0 %2073  ;;  %v2006_v25 = vsel %vm677_vm2, %v3904_v21, %v1989_v37 }
 0x275   :  { %2330 = vmatpush1.msra.mxu1 %v3599_v9  ;;  %v2088_v20 = vsel %vm766_vm1, %v2070_v60, %v2072_v39  ;;  %v2089_v54 = vsel %vm766_vm1, %v2072_v39, %v2074_v42 }
 0x276   :  { %2935 = vmatmul.mubr.msk.f32.vlgmr.msra.gmra.mxu1 %vm916_vm9, %v3908_v16  ;;  %2384 = vmatprep.subr.mxu0 %v2088_v20 }
 0x277   :  { %2385 = vmatpush1.msra.mxu0 %v2087_v62  ;;  %2505 = vmatprep.mubr.f32.mxu1 %v3917_v11 }
 0x278   :  { %v1991_v22 = vpop.permute.xlu1 %1990  ;;  %v1827_v26 = vpop.permute.xlu0 %1826 }
 0x279   :  { %v2007_v43 = vsel %vm677_vm2, %v1989_v37, %v1991_v22  ;;  %v1844_v55 = vsel %vm499_vm4, %v3920_v15, %v1827_v26 }
 0x27a   :  { %2386 = vmatprep.subr.mxu0 %v2007_v43 }
 0x27b   :  { %2387 = vmatpush1.msra.mxu0 %v2006_v25 }
 0x27c   :  { %v1910_v9 = vpop.permute.xlu1 %1909  ;;  %v1993_v44 = vpop.permute.xlu0 %1992 }
 0x27d   :  { %v1926_v45 = vsel %vm588_vm3, %v1908_v38, %v1910_v9  ;;  %v2008_v32 = vsel %vm677_vm2, %v1991_v22, %v1993_v44 }
 0x27e   :  { %2388 = vmatprep.subr.mxu0 %v1926_v45 }
 0x27f   :  { %2389 = vmatpush1.msra.mxu0 %v1925_v50 }
 0x280   :  { %v1829_v51 = vpop.permute.xlu1 %1828  ;;  %v1746_v53 = vpop.permute.xlu0 %1745 }
 0x281   :  { %v1845_v47 = vsel %vm499_vm4, %v1827_v26, %v1829_v51  ;;  %v1763_v0 = vsel %vm410_vm5, %v1744_v33, %v1746_v53 }
 0x282   :  { %2390 = vmatprep.subr.mxu0 %v1845_v47 }
 0x283   :  { %2391 = vmatpush1.msra.mxu0 %v1844_v55 }
 0x284   :  { %v1748_v56 = vpop.permute.xlu1 %1747  ;;  %v1912_v61 = vpop.permute.xlu0 %1911 }
 0x285   :  { %v1764_v52 = vsel %vm410_vm5, %v1746_v53, %v1748_v56  ;;  %v1927_v30 = vsel %vm588_vm3, %v1910_v9, %v1912_v61 }
 0x286   :  { %2392 = vmatprep.subr.mxu0 %v1764_v52 }
 0x287   :  { %2393 = vmatpush1.msra.mxu0 %v1763_v0 }
 0x288   :  { %v1667_v7 = vpop.permute.xlu1 %1666  ;;  %v1665_v2 = vpop.permute.xlu0 %1664 }
 0x289   :  { %v1682_v4 = vsel %vm321_vm6, %v3933_v31, %v1665_v2  ;;  %v1683_v3 = vsel %vm321_vm6, %v1665_v2, %v1667_v7 }
 0x28a   :  { %2394 = vmatprep.subr.mxu0 %v1683_v3 }
 0x28b   :  { %2395 = vmatpush1.msra.mxu0 %v1682_v4 }
 0x28c   :  { %v1586_v6 = vpop.permute.xlu1 %1585  ;;  %v1831_v8 = vpop.permute.xlu0 %1830 }
 0x290   :  { %v1505_v13 = vpop.permute.xlu1 %1504  ;;  %v1584_v18 = vpop.permute.xlu0 %1583 }
 0x291   :  { %v1601_v21 = vsel %vm232_vm7, %v1582_v34, %v1584_v18  ;;  %v1602_v23 = vsel %vm232_vm7, %v1584_v18, %v1586_v6  ;;  %v1846_v34 = vsel %vm499_vm4, %v1829_v51, %v1831_v8 }
 0x292   :  { %2396 = vmatprep.subr.mxu0 %v1602_v23 }
 0x293   :  { %2397 = vmatpush1.msra.mxu0 %v1601_v21 }
 0x294   :  { %v2076_v15 = vpop.permute.xlu1 %2075  ;;  %v1750_v49 = vpop.permute.xlu0 %1749 }
 0x295   :  { %v2090_v14 = vsel %vm766_vm1, %v2074_v42, %v2076_v15  ;;  %v1765_v40 = vsel %vm410_vm5, %v1748_v56, %v1750_v49 }
 0x296   :  { %2455 = vmatprep.subr.mxu1 %v2090_v14 }
 0x297   :  { %2456 = vmatpush1.msra.mxu1 %v2089_v54 }
 0x298   :  { %v3999_v29 = vpop.permute.xlu1 %1994  ;;  %v1503_v31 = vpop.permute.xlu0 %1502 }
 0x299   :  { %v1520_v19 = vsel %vm143_vm8, %v3967_v63, %v1503_v31  ;;  %v1521_v12 = vsel %vm143_vm8, %v1503_v31, %v1505_v13  ;;  %v2009_v58 = vsel %vm677_vm2, %v1993_v44, %v3999_v29 }
 0x29a   :  { %2398 = vmatprep.subr.mxu0 %v1521_v12  ;;  %2457 = vmatprep.subr.mxu1 %v2009_v58 }
 0x29b   :  { %2399 = vmatpush1.msra.mxu0 %v1520_v19  ;;  %2458 = vmatpush1.msra.mxu1 %v2008_v32 }
 0x29c   :  { %v1914_v33 = vpop.permute.xlu1 %1913  ;;  %2400 = vmatprep.subr.mxu0 %v3695_v35  ;;  %v1669_v60 = vpop.permute.xlu0 %1668 }
 0x29d   :  { %2401 = vmatpush1.msra.mxu0 %v3678_v24  ;;  %v1928_v28 = vsel %vm588_vm3, %v1912_v61, %v1914_v33  ;;  %v1684_v5 = vsel %vm321_vm6, %v1667_v7, %v1669_v60 }
 0x29e   :  { %2936 = vmatmul.mubr.msk.f32.vlgmr.msra.gmra.mxu0 %vm916_vm9, %v3908_v16  ;;  %2459 = vmatprep.subr.mxu1 %v1928_v28 }
 0x29f   :  { %2460 = vmatpush1.msra.mxu1 %v1927_v30  ;;  %2576 = vmatprep.mubr.f32.mxu0 %v3917_v11 }
 0x2a0   :  { %v4014_v1 = vpop.permute.xlu1 %1832  ;;  %v1588_v36 = vpop.permute.xlu0 %1587 }
 0x2a1   :  { %v1847_v35 = vsel %vm499_vm4, %v1831_v8, %v4014_v1  ;;  %v1603_v20 = vsel %vm232_vm7, %v1586_v6, %v1588_v36 }
 0x2a2   :  { %2461 = vmatprep.subr.mxu1 %v1847_v35 }
 0x2a3   :  { %2462 = vmatpush1.msra.mxu1 %v1846_v34 }
 0x2a4   :  { %v4019_v24 = vpop.permute.xlu1 %1751  ;;  %v1507_v37 = vpop.permute.xlu0 %1506 }
 0x2a5   :  { %v1766_v59 = vsel %vm410_vm5, %v1750_v49, %v4019_v24  ;;  %v1522_v43 = vsel %vm143_vm8, %v1505_v13, %v1507_v37 }
 0x2a6   :  { %2463 = vmatprep.subr.mxu1 %v1766_v59 }
 0x2a7   :  { %2464 = vmatpush1.msra.mxu1 %v1765_v40 }
 0x2a8   :  { %v4024_v10 = vpop.permute.xlu1 %1670  ;;  %v4026_v63 = vpop.permute.xlu0 %1836 }
 0x2a9   :  { %v1685_v38 = vsel %vm321_vm6, %v1669_v60, %v4024_v10 }
 0x2aa   :  { %2465 = vmatprep.subr.mxu1 %v1685_v38 }
 0x2ab   :  { %2466 = vmatpush1.msra.mxu1 %v1684_v5 }
 0x2ac   :  { %v4031_v41 = vpop.permute.xlu1 %1589  ;;  %v4033_v39 = vpop.permute.xlu0 %1674 }
 0x2ad   :  { %v1604_v42 = vsel %vm232_vm7, %v1588_v36, %v4031_v41 }
 0x2ae   :  { %2467 = vmatprep.subr.mxu1 %v1604_v42 }
 0x2af   :  { %2468 = vmatpush1.msra.mxu1 %v1603_v20 }
 0x2b0   :  { %v4038_v62 = vpop.permute.xlu1 %1508  ;;  %v2078_v22 = vpop.permute.xlu0 %2077 }
 0x2b1   :  { %v1523_v26 = vsel %vm143_vm8, %v1507_v37, %v4038_v62  ;;  %v2091_v45 = vsel %vm766_vm1, %v2076_v15, %v2078_v22 }
 0x2b2   :  { %2469 = vmatprep.subr.mxu1 %v1523_v26 }
 0x2b3   :  { %2470 = vmatpush1.msra.mxu1 %v1522_v43 }
 0x2b4   :  { %v2080_v25 = vpop.permute.xlu1 %2079  ;;  %2471 = vmatprep.subr.mxu1 %v3717_v48 }
 0x2b5   :  { %v1997_v9 = vpop.permute.xlu0 %1996  ;;  %2472 = vmatpush1.msra.mxu1 %v3715_v46  ;;  %v2092_v44 = vsel %vm766_vm1, %v2078_v22, %v2080_v25 }
 0x2b6   :  { %2937 = vmatmul.mubr.msk.f32.vlgmr.msra.gmra.mxu1 %vm916_vm9, %v3908_v16  ;;  %2526 = vmatprep.subr.mxu0 %v2092_v44  ;;  %v2010_v46 = vsel %vm677_vm2, %v3999_v29, %v1997_v9 }
 0x2b7   :  { %2527 = vmatpush1.msra.mxu0 %v2091_v45  ;;  %2950 = vmatprep.subr.mxu1 %v3917_v11 }
 0x2b8   :  { %v1999_v50 = vpop.permute.xlu1 %1998  ;;  %2968 = vmatprep.mubr.msk.f32.mxu1 %vm3068_vm11, %v3917_v11 }
 0x2b9   :  { %v1916_v51 = vpop.permute.xlu0 %1915  ;;  %v2011_v48 = vsel %vm677_vm2, %v1997_v9, %v1999_v50 }
 0x2ba   :  { %2528 = vmatprep.subr.mxu0 %v2011_v48  ;;  %v1929_v56 = vsel %vm588_vm3, %v1914_v33, %v1916_v51 }
 0x2bb   :  { %2529 = vmatpush1.msra.mxu0 %v2010_v46 }
 0x2bc   :  { %v1918_v53 = vpop.permute.xlu1 %1917 }
 0x2bd   :  { %v2082_v47 = vpop.permute.xlu0 %2081  ;;  %v1930_v55 = vsel %vm588_vm3, %v1916_v51, %v1918_v53 }
 0x2be   :  { %v2093_v61 = vsel %vm766_vm1, %v2080_v25, %v2082_v47  ;;  %2530 = vmatprep.subr.mxu0 %v1930_v55 }
 0x2bf   :  { %2951 = vmatpush3.msra.mxu1 %v2093_v61  ;;  %2531 = vmatpush1.msra.mxu0 %v1929_v56 }
 0x2c0   :  { %v1756_v52 = vpop.permute.xlu1 %1755  ;;  %2952 = vmatprep.subr.mxu1 %v3917_v11 }
 0x2c1   :  { %v1754_v0 = vpop.permute.xlu0 %1753 }
 0x2c2   :  { %v1768_v13 = vsel %vm410_vm5, %v1754_v0, %v1756_v52  ;;  %v1767_v18 = vsel %vm410_vm5, %v4019_v24, %v1754_v0 }
 0x2c4   :  { %v1594_v7 = vpop.permute.xlu1 %1593 }
 0x2c5   :  { %v1920_v2 = vpop.permute.xlu0 %1919 }
 0x2c6   :  { %v1931_v15 = vsel %vm588_vm3, %v1918_v53, %v1920_v2 }
 0x2c8   :  { %v1835_v4 = vpop.permute.xlu1 %1834 }
 0x2c9   :  { %v1848_v3 = vsel %vm499_vm4, %v4014_v1, %v1835_v4  ;;  %v1849_v6 = vsel %vm499_vm4, %v1835_v4, %v4026_v63  ;;  %v1592_v8 = vpop.permute.xlu0 %1591 }
 0x2ca   :  { %2532 = vmatprep.subr.mxu0 %v1849_v6  ;;  %v1606_v31 = vsel %vm232_vm7, %v1592_v8, %v1594_v7  ;;  %v1605_v19 = vsel %vm232_vm7, %v4031_v41, %v1592_v8 }
 0x2cb   :  { %2533 = vmatpush1.msra.mxu0 %v1848_v3 }
 0x2cc   :  { %v2001_v21 = vpop.permute.xlu1 %2000  ;;  %2534 = vmatprep.subr.mxu0 %v1768_v13 }
 0x2cd   :  { %v2012_v23 = vsel %vm677_vm2, %v1999_v50, %v2001_v21  ;;  %2535 = vmatpush1.msra.mxu0 %v1767_v18  ;;  %v1758_v49 = vpop.permute.xlu0 %1757 }
 0x2ce   :  { %2953 = vmatpush3.msra.mxu1 %v2012_v23  ;;  %v1769_v33 = vsel %vm410_vm5, %v1756_v52, %v1758_v49 }
 0x2cf   :  { %2954 = vmatprep.subr.mxu1 %v3917_v11 }
 0x2d0   :  { %v1673_v14 = vpop.permute.xlu1 %1672  ;;  %2955 = vmatpush3.msra.mxu1 %v1931_v15 }
 0x2d1   :  { %v1686_v54 = vsel %vm321_vm6, %v4024_v10, %v1673_v14  ;;  %v1687_v29 = vsel %vm321_vm6, %v1673_v14, %v4033_v39  ;;  %2956 = vmatprep.subr.mxu1 %v3917_v11  ;;  %v1513_v32 = vpop.permute.xlu0 %1512 }
 0x2d2   :  { %2536 = vmatprep.subr.mxu0 %v1687_v29 }
 0x2d3   :  { %2537 = vmatpush1.msra.mxu0 %v1686_v54 }
 0x2d4   :  { %v1839_v12 = vpop.permute.xlu1 %1838  ;;  %2538 = vmatprep.subr.mxu0 %v1606_v31 }
 0x2d5   :  { %v1850_v58 = vsel %vm499_vm4, %v4026_v63, %v1839_v12  ;;  %2539 = vmatpush1.msra.mxu0 %v1605_v19  ;;  %v1596_v1 = vpop.permute.xlu0 %1595 }
 0x2d6   :  { %2957 = vmatpush3.msra.mxu1 %v1850_v58  ;;  %v1607_v34 = vsel %vm232_vm7, %v1594_v7, %v1596_v1 }
 0x2d7   :  { %2958 = vmatprep.subr.mxu1 %v3917_v11 }
 0x2d8   :  { %v1511_v60 = vpop.permute.xlu1 %1510  ;;  %2959 = vmatpush3.msra.mxu1 %v1769_v33 }
 0x2d9   :  { %v1524_v28 = vsel %vm143_vm8, %v4038_v62, %v1511_v60  ;;  %v1525_v30 = vsel %vm143_vm8, %v1511_v60, %v1513_v32  ;;  %2960 = vmatprep.subr.mxu1 %v3917_v11 }
 0x2da   :  { %2540 = vmatprep.subr.mxu0 %v1525_v30 }
 0x2db   :  { %2541 = vmatpush1.msra.mxu0 %v1524_v28 }
 0x2dc   :  { %v1677_v36 = vpop.permute.xlu1 %1676  ;;  %2542 = vmatprep.subr.mxu0 %v3824_v27 }
 0x2dd   :  { %v1688_v35 = vsel %vm321_vm6, %v4033_v39, %v1677_v36  ;;  %2543 = vmatpush1.msra.mxu0 %v3764_v57 }
 0x2de   :  { %2938 = vmatmul.mubr.msk.f32.vlgmr.msra.gmra.mxu0 %vm916_vm9, %v3908_v16  ;;  %2961 = vmatpush3.msra.mxu1 %v1688_v35 }
 0x2df   :  { %2962 = vmatprep.subr.mxu1 %v3917_v11 }
 0x2e0   :  { %v1515_v24 = vpop.permute.xlu1 %1514  ;;  %2963 = vmatpush3.msra.mxu1 %v1607_v34 }
 0x2e1   :  { %v1526_v37 = vsel %vm143_vm8, %v1513_v32, %v1515_v24  ;;  %2964 = vmatprep.subr.mxu1 %v3917_v11 }
 0x2e2   :  { %2965 = vmatpush3.msra.mxu1 %v1526_v37  ;;  %v2217_v57 = vpop.permute.xlu0 %2216 }
 0x2e3   :  { %2966 = vmatprep.subr.mxu1 %v3917_v11 }
 0x2e4   :  { %2967 = vmatpush3.msra.mxu1 %v3805_v17 }
 0x2e5   :  { %2969 = vmatmul.mubr.msk.f32.vlgmr.msra.gmra.mxu1 %vm916_vm9, %v3908_v16 }
 0x31e   :  { %v2294_v27 = vpop.f32.mrf.mxu0 }
 0x31f   :  { %v2295_v59 = vadd.f32 %v2294_v27, %v2217_v57 }
 0x320   :  { %v2296_v40 = vpop.f32.mrf.mxu0 }
 0x321   :  { %v2297_v10 = vadd.f32 %v2296_v40, %v2217_v57  ;;  %v4098_v63 = vmax.f32 %v2295_v59, 0.0 }
 0x323   :  { %2811 = vrot.lane.b32.xlu0 %v4098_v63, %s3061_s27  ;;  %2707 = vrot.lane.b32.xlu1 %v4098_v63, %s3064_s30  ;;  %v4104_v38 = vmax.f32 %v2297_v10, 0.0  ;;  %v4197_v10 = vld [vmem:[%s4255_s1 + $0x8] sm:$0xff] }
 0x327   :  { %2761 = vrot.lane.b32.xlu0 %v4104_v38, %s3062_s28  ;;  %2759 = vrot.lane.b32.xlu1 %v4098_v63, %s3062_s28 }
 0x32b   :  { %2709 = vrot.lane.b32.xlu1 %v4104_v38, %s3064_s30 }
 0x32f   :  { %2813 = vrot.lane.b32.xlu1 %v4104_v38, %s3061_s27 }
 0x336   :  { %v2365_v17 = vpop.f32.mrf.mxu1 }
 0x337   :  { %v2366_v16 = vadd.f32 %v2365_v17, %v2217_v57 }
 0x338   :  { %v2367_v11 = vpop.f32.mrf.mxu1 }
 0x339   :  { %v4114_v5 = vmax.f32 %v2366_v16, 0.0  ;;  %v2368_v41 = vadd.f32 %v2367_v11, %v2217_v57 }
 0x33b   :  { %2711 = vrot.lane.b32.xlu0 %v4114_v5, %s3064_s30  ;;  %2763 = vrot.lane.b32.xlu1 %v4114_v5, %s3062_s28  ;;  %v4120_v39 = vmax.f32 %v2368_v41, 0.0  ;;  %v17_v41 = vld [vmem:[%s4255_s1 + $0x10] sm:$0xff] }
 0x33f   :  { %2815 = vrot.lane.b32.xlu0 %v4114_v5, %s3061_s27  ;;  %2765 = vrot.lane.b32.xlu1 %v4120_v39, %s3062_s28 }
 0x343   :  { %2713 = vrot.lane.b32.xlu0 %v4120_v39, %s3064_s30  ;;  %2817 = vrot.lane.b32.xlu1 %v4120_v39, %s3061_s27 }
 0x35e   :  { %v2436_v42 = vpop.f32.mrf.mxu0 }
 0x35f   :  { %v2437_v20 = vadd.f32 %v2436_v42, %v2217_v57 }
 0x360   :  { %v2438_v62 = vpop.f32.mrf.mxu0 }
 0x361   :  { %v4130_v22 = vmax.f32 %v2437_v20, 0.0  ;;  %v2439_v26 = vadd.f32 %v2438_v62, %v2217_v57 }
 0x363   :  { %2715 = vrot.lane.b32.xlu0 %v4130_v22, %s3064_s30  ;;  %2819 = vrot.lane.b32.xlu1 %v4130_v22, %s3061_s27  ;;  %v4136_v43 = vmax.f32 %v2439_v26, 0.0 }
 0x367   :  { %2767 = vrot.lane.b32.xlu0 %v4130_v22, %s3062_s28  ;;  %2717 = vrot.lane.b32.xlu1 %v4136_v43, %s3064_s30 }
 0x36b   :  { %2769 = vrot.lane.b32.xlu1 %v4136_v43, %s3062_s28 }
 0x36f   :  { %2821 = vrot.lane.b32.xlu1 %v4136_v43, %s3061_s27 }
 0x376   :  { %v2507_v25 = vpop.f32.mrf.mxu1 }
 0x377   :  { %v2508_v9 = vadd.f32 %v2507_v25, %v2217_v57  ;;  %v4215_v25 = vld [vmem:[%s4255_s1 + $0x18] sm:$0xff] }
 0x378   :  { %v2509_v44 = vpop.f32.mrf.mxu1 }
 0x379   :  { %v4146_v45 = vmax.f32 %v2508_v9, 0.0  ;;  %v2510_v50 = vadd.f32 %v2509_v44, %v2217_v57 }
 0x37b   :  { %v4148_v51 = vmax.f32 %v2510_v50, 0.0  ;;  %2719 = vrot.lane.b32.xlu0 %v4146_v45, %s3064_s30 }
 0x37d   :  { %2721 = vrot.lane.b32.xlu1 %v4148_v51, %s3064_s30 }
 0x37f   :  { %2771 = vrot.lane.b32.xlu0 %v4146_v45, %s3062_s28 }
 0x381   :  { %2773 = vrot.lane.b32.xlu1 %v4148_v51, %s3062_s28 }
 0x383   :  { %2823 = vrot.lane.b32.xlu0 %v4146_v45, %s3061_s27 }
 0x385   :  { %2825 = vrot.lane.b32.xlu1 %v4148_v51, %s3061_s27 }
 0x395   :  { %v2708_v2 = vpop.permute.xlu1 %2707  ;;  %v2812_v3 = vpop.permute.xlu0 %2811 }
 0x399   :  { %v2760_v4 = vpop.permute.xlu1 %2759  ;;  %v2762_v8 = vpop.permute.xlu0 %2761 }
 0x39a   :  { %v2781_v30 = vsel %vm321_vm6, %v2760_v4, %v2762_v8 }
 0x39d   :  { %v2710_v6 = vpop.permute.xlu1 %2709 }
 0x39e   :  { %v2578_v48 = vpop.f32.mrf.mxu0  ;;  %v2729_v54 = vsel %vm143_vm8, %v2708_v2, %v2710_v6 }
 0x39f   :  { %v2579_v46 = vadd.f32 %v2578_v48, %v2217_v57  ;;  %v2749_v12 = vmax.f32 %v4098_v63, %v2729_v54 }
 0x3a0   :  { %v2580_v53 = vpop.f32.mrf.mxu0 }
 0x3a1   :  { %v4162_v47 = vmax.f32 %v2579_v46, 0.0  ;;  %v2581_v55 = vadd.f32 %v2580_v53, %v2217_v57  ;;  %v2814_v13 = vpop.permute.xlu1 %2813  ;;  %v2801_v34 = vmax.f32 %v2749_v12, %v2781_v30 }
 0x3a2   :  { %v2833_v37 = vsel %vm410_vm5, %v2812_v3, %v2814_v13 }
 0x3a3   :  { %v4164_v56 = vmax.f32 %v2581_v55, 0.0  ;;  %2723 = vrot.lane.b32.xlu0 %v4162_v47, %s3064_s30  ;;  %v2853_v17 = vmax.f32 %v2801_v34, %v2833_v37 }
 0x3a5   :  { %v2649_v61 = vpop.f32.mrf.mxu1  ;;  %2725 = vrot.lane.b32.xlu1 %v4164_v56, %s3064_s30 }
 0x3a6   :  { %v2650_v0 = vadd.f32 %v2649_v61, %v2217_v57 }
 0x3a7   :  { %v2970_v52 = vpop.f32.mrf.mxu1  ;;  %2775 = vrot.lane.b32.xlu0 %v4162_v47, %s3062_s28 }
 0x3a8   :  { %v2663_v7 = vmax.f32 %v2650_v0, 0.0  ;;  %v19_v52 = vld [vmem:[%s4255_s1 + $0x20] sm:$0xff] }
 0x3a9   :  { %2777 = vrot.lane.b32.xlu1 %v4164_v56, %s3062_s28 }
 0x3ab   :  { %2827 = vrot.lane.b32.xlu0 %v4162_v47, %s3061_s27 }
 0x3ad   :  { %2829 = vrot.lane.b32.xlu1 %v4164_v56, %s3061_s27  ;;  %v2712_v18 = vpop.permute.xlu0 %2711  ;;  %v2764_v21 = vpop.permute.xlu1 %2763 }
 0x3ae   :  { %v2730_v14 = vsel %vm143_vm8, %v2710_v6, %v2712_v18  ;;  %v2782_v32 = vsel %vm321_vm6, %v2762_v8, %v2764_v21 }
 0x3af   :  { %2727 = vrot.lane.b32.xlu0 %v2663_v7, %s3064_s30  ;;  %v2750_v31 = vmax.f32 %v4104_v38, %v2730_v14 }
 0x3b1   :  { %v2816_v23 = vpop.permute.xlu0 %2815  ;;  %v2766_v15 = vpop.permute.xlu1 %2765  ;;  %v2802_v33 = vmax.f32 %v2750_v31, %v2782_v32 }
 0x3b2   :  { %v2834_v1 = vsel %vm410_vm5, %v2814_v13, %v2816_v23  ;;  %v2783_v36 = vsel %vm321_vm6, %v2764_v21, %v2766_v15 }
 0x3b3   :  { %2779 = vrot.lane.b32.xlu0 %v2663_v7, %s3062_s28  ;;  %v2854_v57 = vmax.f32 %v2802_v33, %v2834_v1 }
 0x3b5   :  { %v2714_v49 = vpop.permute.xlu0 %2713  ;;  %v2818_v19 = vpop.permute.xlu1 %2817  ;;  %v2864_v20 = vmul.f32 %v2854_v57, %v4197_v10 }
 0x3b6   :  { %v2731_v29 = vsel %vm143_vm8, %v2712_v18, %v2714_v49  ;;  %v2835_v63 = vsel %vm410_vm5, %v2816_v23, %v2818_v19 }
 0x3b7   :  { %2831 = vrot.lane.b32.xlu0 %v2663_v7, %s3061_s27  ;;  %v2751_v58 = vmax.f32 %v4114_v5, %v2731_v29  ;;  %v4204_v5 = vld [vmem:[%s4255_s1] sm:$0xff]  ;;  %s3038_s27 = scalar_lea.vmem %s2918_s26, 32 }
 0x3b8   :  { %v2863_v44 = vmul.f32 %v2853_v17, %v4204_v5 }
 0x3b9   :  { %v2803_v24 = vmax.f32 %v2751_v58, %v2783_v36 }
 0x3ba   :  { %v2868_v46 = vadd.f32 %v2864_v20, %v2863_v44 }
 0x3bb   :  { %v2855_v16 = vmax.f32 %v2803_v24, %v2835_v63 }
 0x3bd   :  { %v2865_v50 = vmul.f32 %v2855_v16, %v17_v41 }
 0x3bf   :  { %v2869_v7 = vadd.f32 %v2868_v46, %v2865_v50 }
 0x3d5   :  { %v2716_v60 = vpop.permute.xlu0 %2715  ;;  %v2820_v28 = vpop.permute.xlu1 %2819 }
 0x3d6   :  { %v2732_v35 = vsel %vm143_vm8, %v2714_v49, %v2716_v60 }
 0x3d7   :  { %v2752_v27 = vmax.f32 %v4120_v39, %v2732_v35  ;;  %v2836_v39 = vsel %vm410_vm5, %v2818_v19, %v2820_v28 }
 0x3d9   :  { %v2768_v59 = vpop.permute.xlu0 %2767  ;;  %v2718_v40 = vpop.permute.xlu1 %2717 }
 0x3da   :  { %v2784_v38 = vsel %vm321_vm6, %v2766_v15, %v2768_v59  ;;  %v2733_v42 = vsel %vm143_vm8, %v2716_v60, %v2718_v40 }
 0x3db   :  { %v2804_v11 = vmax.f32 %v2752_v27, %v2784_v38  ;;  %v2753_v48 = vmax.f32 %v4130_v22, %v2733_v42 }
 0x3dd   :  { %v2856_v62 = vmax.f32 %v2804_v11, %v2836_v39  ;;  %v2770_v26 = vpop.permute.xlu1 %2769 }
 0x3de   :  { %v2785_v9 = vsel %vm321_vm6, %v2768_v59, %v2770_v26 }
 0x3df   :  { %v2866_v53 = vmul.f32 %v2856_v62, %v4215_v25  ;;  %v2805_v55 = vmax.f32 %v2753_v48, %v2785_v9 }
 0x3e1   :  { %v2822_v61 = vpop.permute.xlu1 %2821  ;;  %v2870_v3 = vadd.f32 %v2869_v7, %v2866_v53 }
 0x3e2   :  { %v2837_v0 = vsel %vm410_vm5, %v2820_v28, %v2822_v61 }
 0x3e3   :  { %v2857_v2 = vmax.f32 %v2805_v55, %v2837_v0 }
 0x3e5   :  { %v2867_v4 = vmul.f32 %v2857_v2, %v19_v52 }
 0x3e7   :  { %v2871_v6 = vadd.f32 %v2870_v3, %v2867_v4 }
 0x3e9   :  { %2872 = vadd.xlane.f32.xlu1 %v2871_v6 }
 0x3ed   :  { %v2720_v8 = vpop.permute.xlu0 %2719 }
 0x3ee   :  { %v2734_v22 = vsel %vm143_vm8, %v2718_v40, %v2720_v8 }
 0x3ef   :  { %v2754_v13 = vmax.f32 %v4136_v43, %v2734_v22  ;;  %v2722_v54 = vpop.permute.xlu1 %2721 }
 0x3f0   :  { %v2735_v58 = vsel %vm143_vm8, %v2720_v8, %v2722_v54 }
 0x3f1   :  { %v2772_v18 = vpop.permute.xlu0 %2771  ;;  %v2755_v60 = vmax.f32 %v4146_v45, %v2735_v58 }
 0x3f2   :  { %v2786_v21 = vsel %vm321_vm6, %v2770_v26, %v2772_v18 }
 0x3f3   :  { %v2806_v23 = vmax.f32 %v2754_v13, %v2786_v21  ;;  %v2774_v29 = vpop.permute.xlu1 %2773 }
 0x3f4   :  { %v2787_v33 = vsel %vm321_vm6, %v2772_v18, %v2774_v29 }
 0x3f5   :  { %v2824_v15 = vpop.permute.xlu0 %2823  ;;  %v2807_v36 = vmax.f32 %v2755_v60, %v2787_v33 }
 0x3f6   :  { %v2838_v49 = vsel %vm410_vm5, %v2822_v61, %v2824_v15 }
 0x3f7   :  { %v2858_v14 = vmax.f32 %v2806_v23, %v2838_v49  ;;  %v2826_v31 = vpop.permute.xlu1 %2825 }
 0x3f8   :  { %v2839_v30 = vsel %vm410_vm5, %v2824_v15, %v2826_v31 }
 0x3f9   :  { %v2859_v57 = vmax.f32 %v2807_v36, %v2839_v30  ;;  %v2887_v39 = vmul.f32 %v2858_v14, %v4204_v5 }
 0x3fb   :  { %v2888_v16 = vmul.f32 %v2859_v57, %v4197_v10 }
 0x3fd   :  { %v2892_v9 = vadd.f32 %v2888_v16, %v2887_v39 }
 0x415   :  { %v2724_v19 = vpop.permute.xlu0 %2723 }
 0x416   :  { %v2736_v43 = vsel %vm143_vm8, %v2722_v54, %v2724_v19 }
 0x417   :  { %v2726_v12 = vpop.permute.xlu1 %2725  ;;  %v2756_v35 = vmax.f32 %v4148_v51, %v2736_v43 }
 0x418   :  { %v2737_v24 = vsel %vm143_vm8, %v2724_v19, %v2726_v12 }
 0x419   :  { %v2776_v32 = vpop.permute.xlu0 %2775  ;;  %v2757_v45 = vmax.f32 %v4162_v47, %v2737_v24 }
 0x41a   :  { %v2788_v1 = vsel %vm321_vm6, %v2774_v29, %v2776_v32 }
 0x41b   :  { %v2778_v28 = vpop.permute.xlu1 %2777  ;;  %v2808_v27 = vmax.f32 %v2756_v35, %v2788_v1 }
 0x41c   :  { %v2789_v40 = vsel %vm321_vm6, %v2776_v32, %v2778_v28 }
 0x41d   :  { %v2828_v34 = vpop.permute.xlu0 %2827  ;;  %v2809_v11 = vmax.f32 %v2757_v45, %v2789_v40 }
 0x41e   :  { %v2840_v37 = vsel %vm410_vm5, %v2826_v31, %v2828_v34 }
 0x41f   :  { %v2830_v59 = vpop.permute.xlu1 %2829  ;;  %v2860_v63 = vmax.f32 %v2808_v27, %v2840_v37 }
 0x420   :  { %v2841_v17 = vsel %vm410_vm5, %v2828_v34, %v2830_v59 }
 0x421   :  { %v2728_v38 = vpop.permute.xlu0 %2727  ;;  %v2889_v42 = vmul.f32 %v2860_v63, %v17_v41  ;;  %v2861_v20 = vmax.f32 %v2809_v11, %v2841_v17 }
 0x422   :  { %v2738_v51 = vsel %vm143_vm8, %v2726_v12, %v2728_v38 }
 0x423   :  { %v2758_v44 = vmax.f32 %v4164_v56, %v2738_v51  ;;  %v2893_v47 = vadd.f32 %v2892_v9, %v2889_v42  ;;  %v2890_v50 = vmul.f32 %v2861_v20, %v4215_v25  ;;  %v23_v56 = vld [vmem:[%s4255_s1 + $0x30] ss:$0 sm:$0xff]  ;;  %s3034_s1 = scalar_lea.vmem %s2918_s26, 16 }
 0x424   :  { %p3035_p0 = scmp.ne.s32.totalorder %s2918_s26, %s3034_s1  ;;  %p3040_p2 = scmp.lt.s32.totalorder %s3038_s27, %s3034_s1 }
 0x425   :  { %v2780_v62 = vpop.permute.xlu0 %2779  ;;  %v2894_v61 = vadd.f32 %v2893_v47, %v2890_v50 }
 0x426   :  { %v2790_v26 = vsel %vm321_vm6, %v2778_v28, %v2780_v62  ;;  %p3041_p3 = por %p3040_p2, %p3039_p1 }
 0x427   :  { %v2810_v48 = vmax.f32 %v2758_v44, %v2790_v26 }
 0x428   :  { %p3042_p4 = pnand %p3041_p3, %p3035_p0 }
 0x429   :  { %v2832_v46 = vpop.permute.xlu0 %2831 }
 0x42a   :  { %v2842_v10 = vsel %vm410_vm5, %v2830_v59, %v2832_v46 }
 0x42b   :  { %v2862_v53 = vmax.f32 %v2810_v48, %v2842_v10 }
 0x42d   :  { %v2891_v55 = vmul.f32 %v2862_v53, %v19_v52 }
 0x42f   :  { %v2895_v0 = vadd.f32 %v2894_v61, %v2891_v55 }
 0x431   :  { %2896 = vadd.xlane.f32.xlu0 %v2895_v0 }
 0x472   :  { %v2873_v5 = vpop.xlane.xlu1 %2872 }
 0x473   :  { %v2874_v41 = vrot.slane %v2873_v5, 4 }
 0x475   :  { %v2875_v7 = vadd.f32 %v2874_v41, %v2873_v5 }
 0x477   :  { %v2876_v2 = vrot.slane %v2875_v7, 2 }
 0x479   :  { %v2877_v4 = vadd.f32 %v2876_v2, %v2875_v7 }
 0x47b   :  { %v2878_v3 = vrot.slane %v2877_v4, 1 }
 0x47d   :  { %v2879_v25 = vadd.f32 %v2878_v3, %v2877_v4 }
 0x47f   :  { %v2880_v6 = vadd.f32 %v2879_v25, %v23_v56 }
 0x481   :  { %2882 = vrot.lane.b32.xlu0 %v2880_v6, %s3069_s24 }
 0x4ba   :  { %v2897_v8 = vpop.xlane.xlu0 %2896 }
 0x4bb   :  { %v2898_v22 = vrot.slane %v2897_v8, 4 }
 0x4bd   :  { %v2899_v52 = vadd.f32 %v2898_v22, %v2897_v8 }
 0x4bf   :  { %v2900_v13 = vrot.slane %v2899_v52, 2 }
 0x4c1   :  { %v2901_v18 = vadd.f32 %v2900_v13, %v2899_v52 }
 0x4c3   :  { %v2902_v21 = vrot.slane %v2901_v18, 1 }
 0x4c5   :  { %v2903_v23 = vadd.f32 %v2902_v21, %v2901_v18 }
 0x4c7   :  { %v2904_v15 = vadd.f32 %v2903_v23, %v23_v56 }
 0x4c9   :  { %2906 = vrot.lane.b32.xlu1 %v2904_v15, %s3070_s25 }
 0x4f3   :  { %v2883_v49 = vpop.permute.xlu0 %2882 }
 0x4f4   :  { %2886 = vst.msk [vmem:[#allocation7] sm:$0x1] %vm2885_vm12, %v2883_v49 }
 0x53b   :  { %v2907_v14 = vpop.permute.xlu1 %2906 }
 0x53c   :  { %2910 = vst.msk [vmem:[#allocation7] sm:$0x1] %vm2909_vm13, %v2907_v14 }
 0x53d   :  { %3045 = shalt.err (!%p3042_p4)
}
 0x53e   :  { %2920 = dma.vmem_to_hbm [thread:$0]  %s2918_s26, 16, %s4257_s3, [#allocation8]  }
 0x53f   :  { %3054 = dma.done.wait [#allocation8], 16  }
 0x540   :  { %3055 = vsyncadd [#allocation8], 4294967280 }
 0x541   :  { %2924 = vsyncpa [#allocation8], 1 }

</bundles_post_ra>
